<compile_context>
chip_gen: v6e
topology: v6e:2x2x1
jax: 0.10.0
libtpu: 0.0.40
codegen_flags: <defaults>
</compile_context>

<pallas_src>
import jax
import jax.numpy as jnp
from jax.experimental import pallas as pl
from jax.experimental.pallas import tpu as pltpu


def _round_up(x, m):
    return ((x + m - 1) // m) * m


def _leaky_relu(x, slope=0.2):
    return jnp.where(x > 0, x, slope * x)


# ---------------------------------------------------------------------------
# Pallas kernel: 3 MXU matmuls (bf16 in, f32 accum) + f32 bias/LeakyReLU,
# final 512->1 layer as a VPU multiply + lane reduction.
# ---------------------------------------------------------------------------
def d_mlp_kernel(x_ref, cls_ref, w1_ref, b1_ref, w2_ref, b2_ref,
                 w3_ref, b3_ref, w4_ref, b4_ref, out_ref):
    # Layer 1: Linear(1024 -> 512) on the image path + folded label term + bias.
    h = jnp.dot(x_ref[...], w1_ref[...], preferred_element_type=jnp.float32)
    h = h + cls_ref[...] + b1_ref[...]
    h = _leaky_relu(h)

    # Layer 2: Linear(512 -> 512) + Dropout(identity) + LeakyReLU.
    h = jnp.dot(h.astype(jnp.bfloat16), w2_ref[...],
                preferred_element_type=jnp.float32) + b2_ref[...]
    h = _leaky_relu(h)

    # Layer 3: Linear(512 -> 512) + Dropout(identity) + LeakyReLU.
    h = jnp.dot(h.astype(jnp.bfloat16), w3_ref[...],
                preferred_element_type=jnp.float32) + b3_ref[...]
    h = _leaky_relu(h)

    # Layer 4: Linear(512 -> 1) as VPU multiply + lane reduce (N=1 MXU is waste).
    out = jnp.sum(h * w4_ref[...], axis=-1, keepdims=True) + b4_ref[0]
    out_ref[...] = out.astype(out_ref.dtype)


def d_mlp(x_bf16, cls_rows, p, tb=512):
    """x_bf16: (B, 1024) bf16 flattened image; cls_rows: (B, 512) f32."""
    B = x_bf16.shape[0]
    TB = min(tb, _round_up(B, 8))          # batch tile, multiple of 8 sublanes
    Bp = _round_up(B, TB)
    if Bp != B:
        x_bf16 = jnp.pad(x_bf16, ((0, Bp - B), (0, 0)))
        cls_rows = jnp.pad(cls_rows, ((0, Bp - B), (0, 0)))

    def batch_spec(feat):
        return pl.BlockSpec((TB, feat), lambda i: (i, 0))

    def const_spec(shape):
        return pl.BlockSpec(shape, lambda i: (0, 0))   # resident across grid

    out = pl.pallas_call(
        d_mlp_kernel,
        out_shape=jax.ShapeDtypeStruct((Bp, 1), jnp.float32),
        grid=(Bp // TB,),
        in_specs=[
            batch_spec(1024),                                   # x
            batch_spec(512),                                    # class rows
            const_spec((1024, 512)),                            # w1_img (bf16)
            const_spec((1, 512)),                               # b1 (f32)
            const_spec((512, 512)),                             # w2 (bf16)
            const_spec((1, 512)),                               # b2
            const_spec((512, 512)),                             # w3 (bf16)
            const_spec((1, 512)),                               # b3
            const_spec((1, 512)),                               # w4 row (f32)
            pl.BlockSpec(memory_space=pltpu.MemorySpace.SMEM),  # b4 scalar
        ],
        out_specs=pl.BlockSpec((TB, 1), lambda i: (i, 0)),
        compiler_params=pltpu.CompilerParams(
            dimension_semantics=("parallel",),
        ),
    )(x_bf16, cls_rows, p["w1_img"], p["b1"], p["w2"], p["b2"],
      p["w3"], p["b3"], p["w4_row"], p["b4"])
    return out[:B]


# ---------------------------------------------------------------------------
# Raw parameters (PyTorch-default-style init, f32) and kernel-ready params.
# ---------------------------------------------------------------------------
def init_params(key):
    ks = jax.random.split(key, 9)

    def linear(kw, kb, fan_in, fan_out):
        bound = 1.0 / jnp.sqrt(fan_in)
        w = jax.random.uniform(kw, (fan_in, fan_out), jnp.float32, -bound, bound)
        b = jax.random.uniform(kb, (1, fan_out), jnp.float32, -bound, bound)
        return w, b

    emb = jax.random.normal(ks[0], (10, 10), jnp.float32)
    w1, b1 = linear(ks[1], ks[2], 10 + 1 * 32 * 32, 512)
    w2, b2 = linear(ks[3], ks[4], 512, 512)
    w3, b3 = linear(ks[5], ks[6], 512, 512)
    w4, b4 = linear(ks[7], ks[8], 512, 1)
    return {"emb": emb, "w1": w1, "b1": b1, "w2": w2, "b2": b2,
            "w3": w3, "b3": b3, "w4": w4, "b4": b4}


def prepare_params(raw):
    """Fold the label-embedding path into a 10x512 table and cast weights."""
    w1_img = raw["w1"][:1024]                       # image rows of w1
    w1_lbl = raw["w1"][1024:]                       # embedding rows of w1
    class_tab = jnp.dot(raw["emb"], w1_lbl)         # (10, 512) f32, exact fold
    return {
        "w1_img": w1_img.astype(jnp.bfloat16),
        "class_tab": class_tab,
        "b1": raw["b1"],
        "w2": raw["w2"].astype(jnp.bfloat16),
        "b2": raw["b2"],
        "w3": raw["w3"].astype(jnp.bfloat16),
        "b3": raw["b3"],
        "w4_row": raw["w4"].T,                      # (1, 512) f32
        "b4": raw["b4"].reshape(1),                 # (1,) f32 SMEM scalar
    }


# ---------------------------------------------------------------------------
# Forward pass: flatten + class-table gather in plain JAX, MLP in Pallas.
# Note: for a GAN loop, concatenate real+fake batches before calling this to
# amortize the weight DMA over more MXU rows.
# ---------------------------------------------------------------------------
@jax.jit
def d_forward(img, label, kparams):
    B = img.shape[0]
    img_flat = img.reshape(B, -1).astype(jnp.bfloat16)          # (B, 1024)
    cls_rows = jnp.take(kparams["class_tab"], label, axis=0)    # (B, 512) f32
    return d_mlp(img_flat, cls_rows, kparams)                   # (B, 1)


if __name__ == "__main__":
    key = jax.random.PRNGKey(0)
    k_param, k_img, k_lbl = jax.random.split(key, 3)

    raw = init_params(k_param)
    kparams = prepare_params(raw)

    B = 8
    img = jax.random.normal(k_img, (B, 1, 32, 32), jnp.float32)   # NCHW
    label = jax.random.randint(k_lbl, (B,), 0, 10, jnp.int32)

    validity = d_forward(img, label, kparams)
    jax.block_until_ready(validity)

    # Pure-JAX reference doing the same math (bf16 dot inputs, f32 accum,
    # folded label path) — validates the Pallas kernel bit-for-intent.
    # TODO(synk): Dropout(0.4) is a training-mode op; implemented as the
    # inference-time identity here.
    def ref_forward(img, label, p):
        x = img.reshape(img.shape[0], -1)
        h = jnp.dot(x.astype(jnp.bfloat16), p["w1"][:1024].astype(jnp.bfloat16),
                    preferred_element_type=jnp.float32)
        h = h + jnp.dot(p["emb"][label], p["w1"][1024:]) + p["b1"]
        h = jnp.where(h > 0, h, 0.2 * h)
        h = jnp.dot(h.astype(jnp.bfloat16), p["w2"].astype(jnp.bfloat16),
                    preferred_element_type=jnp.float32) + p["b2"]
        h = jnp.where(h > 0, h, 0.2 * h)
        h = jnp.dot(h.astype(jnp.bfloat16), p["w3"].astype(jnp.bfloat16),
                    preferred_element_type=jnp.float32) + p["b3"]
        h = jnp.where(h > 0, h, 0.2 * h)
        return jnp.dot(h, p["w4"]) + p["b4"]

    ref = ref_forward(img, label, raw)
    assert validity.shape == (B, 1)
    assert jnp.allclose(validity, ref, atol=1e-2, rtol=1e-2), float(
        jnp.max(jnp.abs(validity - ref)))

    print("KERNEL_OK")
</pallas_src>

<mosaic_0001>
module attributes {stable_mosaic.version = 11 : i64} {
  func.func @d_mlp_kernel(%arg0: i32, %arg1: memref<8x1024xbf16, #tpu.memory_space<vmem>>, %arg2: memref<8x512xf32, #tpu.memory_space<vmem>>, %arg3: memref<1024x512xbf16, #tpu.memory_space<vmem>>, %arg4: memref<1x512xf32, #tpu.memory_space<vmem>>, %arg5: memref<512x512xbf16, #tpu.memory_space<vmem>>, %arg6: memref<1x512xf32, #tpu.memory_space<vmem>>, %arg7: memref<512x512xbf16, #tpu.memory_space<vmem>>, %arg8: memref<1x512xf32, #tpu.memory_space<vmem>>, %arg9: memref<1x512xf32, #tpu.memory_space<vmem>>, %arg10: memref<1xf32, #tpu.memory_space<smem>>, %arg11: memref<8x1xf32, #tpu.memory_space<vmem>>) attributes {dimension_semantics = [#tpu.dimension_semantics<parallel>], iteration_bounds = array<i64: 1>, scalar_prefetch = 0 : i64, scratch_operands = 0 : i64, tpu.core_type = #tpu.core_type<tc>, window_params = [{transform_indices = @transform_0, window_bounds = array<i64: 8, 1024>}, {transform_indices = @transform_1, window_bounds = array<i64: 8, 512>}, {pipeline_mode = #tpu.pipeline_mode<synchronous>, transform_indices = @transform_2, window_bounds = array<i64: 1024, 512>}, {pipeline_mode = #tpu.pipeline_mode<synchronous>, transform_indices = @transform_3, window_bounds = array<i64: 1, 512>}, {pipeline_mode = #tpu.pipeline_mode<synchronous>, transform_indices = @transform_4, window_bounds = array<i64: 512, 512>}, {pipeline_mode = #tpu.pipeline_mode<synchronous>, transform_indices = @transform_5, window_bounds = array<i64: 1, 512>}, {pipeline_mode = #tpu.pipeline_mode<synchronous>, transform_indices = @transform_6, window_bounds = array<i64: 512, 512>}, {pipeline_mode = #tpu.pipeline_mode<synchronous>, transform_indices = @transform_7, window_bounds = array<i64: 1, 512>}, {pipeline_mode = #tpu.pipeline_mode<synchronous>, transform_indices = @transform_8, window_bounds = array<i64: 1, 512>}, {transform_indices = @transform_9, window_bounds = array<i64: 1>}, {transform_indices = @transform_10, window_bounds = array<i64: 8, 1>}]} {
    %c0 = arith.constant 0 : index
    %c0_0 = arith.constant 0 : index
    %0 = vector.load %arg1[%c0, %c0_0] : memref<8x1024xbf16, #tpu.memory_space<vmem>>, vector<8x1024xbf16>
    %c0_1 = arith.constant 0 : index
    %c0_2 = arith.constant 0 : index
    %1 = vector.load %arg3[%c0_1, %c0_2] : memref<1024x512xbf16, #tpu.memory_space<vmem>>, vector<1024x512xbf16>
    %cst = arith.constant dense<0.000000e+00> : vector<8x512xf32>
    %2 = tpu.matmul %0, %1, %cst {dimension_numbers = #tpu.dot_dimension_numbers<[1], [0], [0], [1], [0, 0, 1, 1], [], []>} : vector<8x1024xbf16>, vector<1024x512xbf16>, vector<8x512xf32> -> vector<8x512xf32>
    %c0_3 = arith.constant 0 : index
    %c0_4 = arith.constant 0 : index
    %3 = vector.load %arg2[%c0_3, %c0_4] : memref<8x512xf32, #tpu.memory_space<vmem>>, vector<8x512xf32>
    %4 = arith.addf %2, %3 : vector<8x512xf32>
    %c0_5 = arith.constant 0 : index
    %c0_6 = arith.constant 0 : index
    %5 = vector.load %arg4[%c0_5, %c0_6] : memref<1x512xf32, #tpu.memory_space<vmem>>, vector<1x512xf32>
    %6 = vector.broadcast %5 : vector<1x512xf32> to vector<8x512xf32>
    %7 = arith.addf %4, %6 : vector<8x512xf32>
    %cst_7 = arith.constant 0.000000e+00 : f32
    %8 = vector.broadcast %cst_7 : f32 to vector<8x512xf32>
    %9 = arith.cmpf ogt, %7, %8 : vector<8x512xf32>
    %cst_8 = arith.constant 2.000000e-01 : f32
    %10 = vector.broadcast %cst_8 : f32 to vector<8x512xf32>
    %11 = arith.mulf %10, %7 : vector<8x512xf32>
    %12 = arith.select %9, %7, %11 : vector<8x512xi1>, vector<8x512xf32>
    %13 = arith.truncf %12 : vector<8x512xf32> to vector<8x512xbf16>
    %c0_9 = arith.constant 0 : index
    %c0_10 = arith.constant 0 : index
    %14 = vector.load %arg5[%c0_9, %c0_10] : memref<512x512xbf16, #tpu.memory_space<vmem>>, vector<512x512xbf16>
    %cst_11 = arith.constant dense<0.000000e+00> : vector<8x512xf32>
    %15 = tpu.matmul %13, %14, %cst_11 {dimension_numbers = #tpu.dot_dimension_numbers<[1], [0], [0], [1], [0, 0, 1, 1], [], []>} : vector<8x512xbf16>, vector<512x512xbf16>, vector<8x512xf32> -> vector<8x512xf32>
    %c0_12 = arith.constant 0 : index
    %c0_13 = arith.constant 0 : index
    %16 = vector.load %arg6[%c0_12, %c0_13] : memref<1x512xf32, #tpu.memory_space<vmem>>, vector<1x512xf32>
    %17 = vector.broadcast %16 : vector<1x512xf32> to vector<8x512xf32>
    %18 = arith.addf %15, %17 : vector<8x512xf32>
    %cst_14 = arith.constant 0.000000e+00 : f32
    %19 = vector.broadcast %cst_14 : f32 to vector<8x512xf32>
    %20 = arith.cmpf ogt, %18, %19 : vector<8x512xf32>
    %cst_15 = arith.constant 2.000000e-01 : f32
    %21 = vector.broadcast %cst_15 : f32 to vector<8x512xf32>
    %22 = arith.mulf %21, %18 : vector<8x512xf32>
    %23 = arith.select %20, %18, %22 : vector<8x512xi1>, vector<8x512xf32>
    %24 = arith.truncf %23 : vector<8x512xf32> to vector<8x512xbf16>
    %c0_16 = arith.constant 0 : index
    %c0_17 = arith.constant 0 : index
    %25 = vector.load %arg7[%c0_16, %c0_17] : memref<512x512xbf16, #tpu.memory_space<vmem>>, vector<512x512xbf16>
    %cst_18 = arith.constant dense<0.000000e+00> : vector<8x512xf32>
    %26 = tpu.matmul %24, %25, %cst_18 {dimension_numbers = #tpu.dot_dimension_numbers<[1], [0], [0], [1], [0, 0, 1, 1], [], []>} : vector<8x512xbf16>, vector<512x512xbf16>, vector<8x512xf32> -> vector<8x512xf32>
    %c0_19 = arith.constant 0 : index
    %c0_20 = arith.constant 0 : index
    %27 = vector.load %arg8[%c0_19, %c0_20] : memref<1x512xf32, #tpu.memory_space<vmem>>, vector<1x512xf32>
    %28 = vector.broadcast %27 : vector<1x512xf32> to vector<8x512xf32>
    %29 = arith.addf %26, %28 : vector<8x512xf32>
    %cst_21 = arith.constant 0.000000e+00 : f32
    %30 = vector.broadcast %cst_21 : f32 to vector<8x512xf32>
    %31 = arith.cmpf ogt, %29, %30 : vector<8x512xf32>
    %cst_22 = arith.constant 2.000000e-01 : f32
    %32 = vector.broadcast %cst_22 : f32 to vector<8x512xf32>
    %33 = arith.mulf %32, %29 : vector<8x512xf32>
    %34 = arith.select %31, %29, %33 : vector<8x512xi1>, vector<8x512xf32>
    %c0_23 = arith.constant 0 : index
    %c0_24 = arith.constant 0 : index
    %35 = vector.load %arg9[%c0_23, %c0_24] : memref<1x512xf32, #tpu.memory_space<vmem>>, vector<1x512xf32>
    %36 = vector.broadcast %35 : vector<1x512xf32> to vector<8x512xf32>
    %37 = arith.mulf %34, %36 : vector<8x512xf32>
    %cst_25 = arith.constant dense<0.000000e+00> : vector<8xf32>
    %38 = vector.multi_reduction <add>, %37, %cst_25 [1] : vector<8x512xf32> to vector<8xf32>
    %39 = vector.shape_cast %38 : vector<8xf32> to vector<8x1xf32>
    %c0_26 = arith.constant 0 : index
    %40 = memref.load %arg10[%c0_26] : memref<1xf32, #tpu.memory_space<smem>>
    %41 = vector.broadcast %40 : f32 to vector<8x1xf32>
    %42 = arith.addf %39, %41 : vector<8x1xf32>
    %c0_27 = arith.constant 0 : index
    %c0_28 = arith.constant 0 : index
    %43 = vector.load %arg11[%c0_27, %c0_28] : memref<8x1xf32, #tpu.memory_space<vmem>>, vector<8x1xf32>
    tpu.vector_store %arg11[%c0_27, %c0_28], %42 {strides = array<i32>} : memref<8x1xf32, #tpu.memory_space<vmem>>, vector<8x1xf32>,
    return
  }
  func.func @transform_0(%arg0: i32) -> (i32, i32) {
    %c0_i32 = arith.constant 0 : i32
    %c0_i32_0 = arith.constant 0 : i32
    return %arg0, %c0_i32 : i32, i32
  }
  func.func @transform_1(%arg0: i32) -> (i32, i32) {
    %c0_i32 = arith.constant 0 : i32
    %c0_i32_0 = arith.constant 0 : i32
    return %arg0, %c0_i32 : i32, i32
  }
  func.func @transform_2(%arg0: i32) -> (i32, i32) {
    %c0_i32 = arith.constant 0 : i32
    %c0_i32_0 = arith.constant 0 : i32
    %c0_i32_1 = arith.constant 0 : i32
    return %c0_i32, %c0_i32_0 : i32, i32
  }
  func.func @transform_3(%arg0: i32) -> (i32, i32) {
    %c0_i32 = arith.constant 0 : i32
    %c0_i32_0 = arith.constant 0 : i32
    %c0_i32_1 = arith.constant 0 : i32
    return %c0_i32, %c0_i32_0 : i32, i32
  }
  func.func @transform_4(%arg0: i32) -> (i32, i32) {
    %c0_i32 = arith.constant 0 : i32
    %c0_i32_0 = arith.constant 0 : i32
    %c0_i32_1 = arith.constant 0 : i32
    return %c0_i32, %c0_i32_0 : i32, i32
  }
  func.func @transform_5(%arg0: i32) -> (i32, i32) {
    %c0_i32 = arith.constant 0 : i32
    %c0_i32_0 = arith.constant 0 : i32
    %c0_i32_1 = arith.constant 0 : i32
    return %c0_i32, %c0_i32_0 : i32, i32
  }
  func.func @transform_6(%arg0: i32) -> (i32, i32) {
    %c0_i32 = arith.constant 0 : i32
    %c0_i32_0 = arith.constant 0 : i32
    %c0_i32_1 = arith.constant 0 : i32
    return %c0_i32, %c0_i32_0 : i32, i32
  }
  func.func @transform_7(%arg0: i32) -> (i32, i32) {
    %c0_i32 = arith.constant 0 : i32
    %c0_i32_0 = arith.constant 0 : i32
    %c0_i32_1 = arith.constant 0 : i32
    return %c0_i32, %c0_i32_0 : i32, i32
  }
  func.func @transform_8(%arg0: i32) -> (i32, i32) {
    %c0_i32 = arith.constant 0 : i32
    %c0_i32_0 = arith.constant 0 : i32
    %c0_i32_1 = arith.constant 0 : i32
    return %c0_i32, %c0_i32_0 : i32, i32
  }
  func.func @transform_9(%arg0: i32) -> i32 {
    %c0_i32 = arith.constant 0 : i32
    %c0_i32_0 = arith.constant 0 : i32
    return %c0_i32 : i32
  }
  func.func @transform_10(%arg0: i32) -> (i32, i32) {
    %c0_i32 = arith.constant 0 : i32
    %c0_i32_0 = arith.constant 0 : i32
    return %arg0, %c0_i32 : i32, i32
  }
}

</mosaic_0001>

<bundles_post_ra>
// kernel: d_forward.1
= control target key start
LH: loop header
LB: loop body
LE: loop exit
PB: predicated region body
PF: predicated region fallthrough
CT: control target
= control target key end

     0   :  { %16 = vsyncpa [#allocation4], 0  ;;  %s5599_s0 = inlined_call_operand.vmem [shape: bf16[8,1024], index: 0, kind: input, shape index: {}]   ;;  %s5600_s1 = inlined_call_operand.vmem [shape: f32[8,512], index: 1, kind: input, shape index: {}]   ;;  %s5601_s2 = inlined_call_operand.hbm [shape: bf16[1024,512], index: 2, kind: input, shape index: {}]   ;;  %s5602_s3 = inlined_call_operand.vmem [shape: f32[1,512], index: 3, kind: input, shape index: {}]   ;;  %s5603_s4 = inlined_call_operand.hbm [shape: bf16[512,512], index: 4, kind: input, shape index: {}]   ;;  %s5604_s5 = inlined_call_operand.vmem [shape: f32[1,512], index: 5, kind: input, shape index: {}]   ;;  %s5605_s6 = inlined_call_operand.hbm [shape: bf16[512,512], index: 6, kind: input, shape index: {}]   ;;  %s5606_s7 = inlined_call_operand.vmem [shape: f32[1,512], index: 7, kind: input, shape index: {}]   ;;  %s5607_s8 = inlined_call_operand.vmem [shape: f32[1,512], index: 8, kind: input, shape index: {}]   ;;  %s5608_s9 = inlined_call_operand.<no memory space> [shape: f32[1], index: 9, kind: input, shape index: {}]   ;;  %s5609_s10 = inlined_call_operand.vmem [shape: f32[8,1], index: 10, kind: output, shape index: {}]  }
   0x1   :  { %17 = vsyncpa [#allocation6], 0  ;;  %s5362_s13 = smov [#allocation5]   ;;  %s5363_s15 = smov [#allocation3]  }
   0x2   :  { %s41_s14 = sshll.u32 %s5362_s13, 4  ;;  %s27_s16 = sshll.u32 %s5363_s15, 4  ;;  %s42_s14 = int_to_ptr.vmem [resolvable:$true] %s41_s14  ;;  %s28_s16 = int_to_ptr.vmem [resolvable:$true] %s27_s16 }
   0x3   :  { %s5306_s17 = scalar_lea.vmem %s42_s14, 16384  ;;  %p5311_p1 = scmp.lt.s32.totalorder %s42_s14, %s42_s14 }
   0x4   :  { %p5307_p0 = scmp.ne.s32.totalorder %s42_s14, %s5306_s17  ;;  %p5312_p2 = scmp.lt.s32.totalorder %s5306_s17, %s5306_s17 }
   0x6   :  { %p5313_p3 = por %p5312_p2, %p5311_p1 }
   0x8   :  { %p5314_p4 = pnand %p5313_p3, %p5307_p0 }
   0xa   :  { %5317 = shalt.err (!%p5314_p4)
}
   0xb   :  { %s5364_s18 = smov 256   ;;  %s5365_s19 = smov 16  }
   0xc   :  { %47 = dma.hbm_to_vmem [thread:$0]  %s5603_s4, 16384, %s42_s14, [#allocation6], %s5364_s18, %s5364_s18, %s5365_s19  }
   0xd   :  { %s5326_s22 = scalar_lea.vmem %s28_s16, 32768  ;;  %p5331_p6 = scmp.lt.s32.totalorder %s28_s16, %s28_s16 }
   0xe   :  { %p5327_p5 = scmp.ne.s32.totalorder %s28_s16, %s5326_s22  ;;  %p5332_p7 = scmp.lt.s32.totalorder %s5326_s22, %s5326_s22 }
  0x10   :  { %p5333_p8 = por %p5332_p7, %p5331_p6 }
  0x12   :  { %p5334_p9 = pnand %p5333_p8, %p5327_p5 }
  0x14   :  { %5337 = shalt.err (!%p5334_p9)
}
  0x15   :  { %33 = dma.hbm_to_vmem [thread:$0]  %s5601_s2, 32768, %s28_s16, [#allocation4], %s5364_s18, %s5364_s18, %s5365_s19  }
  0x16   :  { %s5366_s25 = smov [#allocation7]  }
  0x17   :  { %s55_s26 = sshll.u32 %s5366_s25, 4  ;;  %s56_s26 = int_to_ptr.vmem [resolvable:$true] %s55_s26 }
  0x18   :  { %s5346_s27 = scalar_lea.vmem %s56_s26, 16384  ;;  %p5351_p11 = scmp.lt.s32.totalorder %s56_s26, %s56_s26 }
  0x19   :  { %p5347_p10 = scmp.ne.s32.totalorder %s56_s26, %s5346_s27  ;;  %p5352_p12 = scmp.lt.s32.totalorder %s5346_s27, %s5346_s27 }
  0x1b   :  { %p5353_p13 = por %p5352_p12, %p5351_p11 }
  0x1d   :  { %p5354_p0 = pnand %p5353_p13, %p5347_p10 }
  0x1f   :  { %5357 = shalt.err (!%p5354_p0)
}
  0x20   :  { %61 = dma.hbm_to_vmem [thread:$0]  %s5605_s6, 16384, %s56_s26, [#allocation6], %s5364_s18, %s5364_s18, %s5365_s19  }
  0x21   :  { %5358 = dma.done.wait [#allocation4], 32768  }
  0x22   :  { %5359 = vsyncadd [#allocation4], 4294934528 }
  0x23   :  { %5360 = dma.done.wait [#allocation6], 32768  }
  0x24   :  { %5361 = vsyncadd [#allocation6], 4294934528  ;;  %v4522_v0 = vld [vmem:[#allocation3 + $0xe4] ss:$16 sps:$4 sm:$0xff]   ;;  %v4526_v2 = vld [vmem:[#allocation3 + $0xe0] ss:$16 sps:$4 sm:$0xff]  }
  0x25   :  { %v4524_v1 = vld [vmem:[#allocation3 + $0x2e4] ss:$16 sps:$4 sm:$0xff]   ;;  %1649 = vmatprep.subr.bf16.mxu0 %v4522_v0  ;;  %v4527_v3 = vld [vmem:[#allocation3 + $0x2e0] ss:$16 sps:$4 sm:$0xff]   ;;  %v78_v48 = vld [vmem:[%s5599_s0 + $0x8] sm:$0xff]  ;;  %vm3989_vm12 = vcmask 7168  }
  0x26   :  { %1690 = vmatprep.subr.bf16.mxu1 %v4524_v1  ;;  %v4528_v4 = vld [vmem:[#allocation3 + $0xc4] ss:$16 sps:$4 sm:$0xff]   ;;  %1650 = vmatpush1.bf16.msra.mxu0 %v4526_v2  ;;  %v4532_v6 = vld [vmem:[#allocation3 + $0xc0] ss:$16 sps:$4 sm:$0xff]   ;;  %v5439_v51 = vcombine.high %v78_v48, %v78_v48 }
  0x27   :  { %1691 = vmatpush1.bf16.msra.mxu1 %v4527_v3  ;;  %v4530_v5 = vld [vmem:[#allocation3 + $0x2c4] ss:$16 sps:$4 sm:$0xff]   ;;  %1651 = vmatprep.subr.bf16.mxu0 %v4528_v4  ;;  %v4533_v7 = vld [vmem:[#allocation3 + $0x2c0] ss:$16 sps:$4 sm:$0xff]  }
  0x28   :  { %1692 = vmatprep.subr.bf16.mxu1 %v4530_v5  ;;  %v4534_v8 = vld [vmem:[#allocation3 + $0xa4] ss:$16 sps:$4 sm:$0xff]   ;;  %v4538_v10 = vld [vmem:[#allocation3 + $0xa0] ss:$16 sps:$4 sm:$0xff]   ;;  %1722 = vmatprep.mubr.bf16.mxu1 %v5439_v51 }
  0x29   :  { %v4536_v9 = vld [vmem:[#allocation3 + $0x2a4] ss:$16 sps:$4 sm:$0xff]   ;;  %v4539_v11 = vld [vmem:[#allocation3 + $0x2a0] ss:$16 sps:$4 sm:$0xff]  }
  0x2a   :  { %1652 = vmatpush1.bf16.msra.mxu0 %v4532_v6  ;;  %v4540_v12 = vld [vmem:[#allocation3 + $0x84] ss:$16 sps:$4 sm:$0xff]   ;;  %v4544_v14 = vld [vmem:[#allocation3 + $0x80] ss:$16 sps:$4 sm:$0xff]  }
  0x2b   :  { %1693 = vmatpush1.bf16.msra.mxu1 %v4533_v7  ;;  %1653 = vmatprep.subr.bf16.mxu0 %v4534_v8  ;;  %v4542_v13 = vld [vmem:[#allocation3 + $0x284] ss:$16 sps:$4 sm:$0xff]   ;;  %v4545_v15 = vld [vmem:[#allocation3 + $0x280] ss:$16 sps:$4 sm:$0xff]   ;;  %v5445_v7 = vcombine.low %v78_v48, %v78_v48 }
  0x2c   :  { %1694 = vmatprep.subr.bf16.mxu1 %v4536_v9  ;;  %v4546_v16 = vld [vmem:[#allocation3 + $0x64] ss:$16 sps:$4 sm:$0xff]   ;;  %v4550_v18 = vld [vmem:[#allocation3 + $0x60] ss:$16 sps:$4 sm:$0xff]  }
  0x2d   :  { %v4548_v17 = vld [vmem:[#allocation3 + $0x264] ss:$16 sps:$4 sm:$0xff]   ;;  %v4551_v19 = vld [vmem:[#allocation3 + $0x260] ss:$16 sps:$4 sm:$0xff]  }
  0x2e   :  { %1654 = vmatpush1.bf16.msra.mxu0 %v4538_v10  ;;  %v4552_v20 = vld [vmem:[#allocation3 + $0x44] ss:$16 sps:$4 sm:$0xff]   ;;  %v4556_v22 = vld [vmem:[#allocation3 + $0x40] ss:$16 sps:$4 sm:$0xff]  }
  0x2f   :  { %1695 = vmatpush1.bf16.msra.mxu1 %v4539_v11  ;;  %1655 = vmatprep.subr.bf16.mxu0 %v4540_v12  ;;  %v4554_v21 = vld [vmem:[#allocation3 + $0x244] ss:$16 sps:$4 sm:$0xff]   ;;  %v4557_v23 = vld [vmem:[#allocation3 + $0x240] ss:$16 sps:$4 sm:$0xff]  }
  0x30   :  { %1696 = vmatprep.subr.bf16.mxu1 %v4542_v13  ;;  %v4558_v24 = vld [vmem:[#allocation3 + $0x24] ss:$16 sps:$4 sm:$0xff]   ;;  %v4562_v26 = vld [vmem:[#allocation3 + $0x20] ss:$16 sps:$4 sm:$0xff]  }
  0x31   :  { %v4560_v25 = vld [vmem:[#allocation3 + $0x224] ss:$16 sps:$4 sm:$0xff]   ;;  %v4563_v27 = vld [vmem:[#allocation3 + $0x220] ss:$16 sps:$4 sm:$0xff]  }
  0x32   :  { %1656 = vmatpush1.bf16.msra.mxu0 %v4544_v14  ;;  %v4564_v28 = vld [vmem:[#allocation3 + $0x4] ss:$16 sps:$4 sm:$0xff]   ;;  %v4568_v30 = vld [vmem:[#allocation3] ss:$16 sps:$4 sm:$0xff]  }
  0x33   :  { %1697 = vmatpush1.bf16.msra.mxu1 %v4545_v15  ;;  %1657 = vmatprep.subr.bf16.mxu0 %v4546_v16  ;;  %v4566_v29 = vld [vmem:[#allocation3 + $0x204] ss:$16 sps:$4 sm:$0xff]   ;;  %v4569_v31 = vld [vmem:[#allocation3 + $0x200] ss:$16 sps:$4 sm:$0xff]  }
  0x34   :  { %1698 = vmatprep.subr.bf16.mxu1 %v4548_v17  ;;  %v4570_v32 = vld [vmem:[#allocation3 + $0x1e4] ss:$16 sps:$4 sm:$0xff]   ;;  %v4574_v34 = vld [vmem:[#allocation3 + $0x1e0] ss:$16 sps:$4 sm:$0xff]  }
  0x35   :  { %v4572_v33 = vld [vmem:[#allocation3 + $0x3e4] ss:$16 sps:$4 sm:$0xff]   ;;  %v4575_v35 = vld [vmem:[#allocation3 + $0x3e0] ss:$16 sps:$4 sm:$0xff]  }
  0x36   :  { %1658 = vmatpush1.bf16.msra.mxu0 %v4550_v18  ;;  %v4576_v36 = vld [vmem:[#allocation3 + $0x1c4] ss:$16 sps:$4 sm:$0xff]   ;;  %v4580_v38 = vld [vmem:[#allocation3 + $0x1c0] ss:$16 sps:$4 sm:$0xff]  }
  0x37   :  { %1699 = vmatpush1.bf16.msra.mxu1 %v4551_v19  ;;  %1659 = vmatprep.subr.bf16.mxu0 %v4552_v20  ;;  %v4578_v37 = vld [vmem:[#allocation3 + $0x3c4] ss:$16 sps:$4 sm:$0xff]   ;;  %v4581_v39 = vld [vmem:[#allocation3 + $0x3c0] ss:$16 sps:$4 sm:$0xff]  }
  0x38   :  { %1700 = vmatprep.subr.bf16.mxu1 %v4554_v21  ;;  %v4582_v40 = vld [vmem:[#allocation3 + $0x1a4] ss:$16 sps:$4 sm:$0xff]   ;;  %v4586_v42 = vld [vmem:[#allocation3 + $0x1a0] ss:$16 sps:$4 sm:$0xff]  }
  0x39   :  { %v4584_v41 = vld [vmem:[#allocation3 + $0x3a4] ss:$16 sps:$4 sm:$0xff]   ;;  %v4587_v43 = vld [vmem:[#allocation3 + $0x3a0] ss:$16 sps:$4 sm:$0xff]  }
  0x3a   :  { %1660 = vmatpush1.bf16.msra.mxu0 %v4556_v22  ;;  %v4588_v44 = vld [vmem:[#allocation3 + $0x184] ss:$16 sps:$4 sm:$0xff]   ;;  %v4592_v49 = vld [vmem:[#allocation3 + $0x180] ss:$16 sps:$4 sm:$0xff]  }
  0x3b   :  { %1701 = vmatpush1.bf16.msra.mxu1 %v4557_v23  ;;  %1661 = vmatprep.subr.bf16.mxu0 %v4558_v24  ;;  %v4590_v45 = vld [vmem:[#allocation3 + $0x384] ss:$16 sps:$4 sm:$0xff]   ;;  %v4593_v50 = vld [vmem:[#allocation3 + $0x380] ss:$16 sps:$4 sm:$0xff]  }
  0x3c   :  { %1702 = vmatprep.subr.bf16.mxu1 %v4560_v25  ;;  %v77_v46 = vld [vmem:[%s5599_s0] sm:$0xff] }
  0x3d   :  { %v5434_v47 = vcombine.high %v77_v46, %v77_v46  ;;  %v4594_v52 = vld [vmem:[#allocation3 + $0x164] ss:$16 sps:$4 sm:$0xff]   ;;  %v4598_v54 = vld [vmem:[#allocation3 + $0x160] ss:$16 sps:$4 sm:$0xff]   ;;  %v5443_v6 = vcombine.low %v77_v46, %v77_v46 }
  0x3e   :  { %1662 = vmatpush1.bf16.msra.mxu0 %v4562_v26  ;;  %v4596_v53 = vld [vmem:[#allocation3 + $0x364] ss:$16 sps:$4 sm:$0xff]   ;;  %v4599_v55 = vld [vmem:[#allocation3 + $0x360] ss:$16 sps:$4 sm:$0xff]  }
  0x3f   :  { %1703 = vmatpush1.bf16.msra.mxu1 %v4563_v27  ;;  %1663 = vmatprep.subr.bf16.mxu0 %v4564_v28  ;;  %v4600_v56 = vld [vmem:[#allocation3 + $0x144] ss:$16 sps:$4 sm:$0xff]   ;;  %v4604_v58 = vld [vmem:[#allocation3 + $0x140] ss:$16 sps:$4 sm:$0xff]  }
  0x40   :  { %1704 = vmatprep.subr.bf16.mxu1 %v4566_v29  ;;  %1681 = vmatprep.mubr.bf16.mxu0 %v5434_v47  ;;  %v4602_v57 = vld [vmem:[#allocation3 + $0x344] ss:$16 sps:$4 sm:$0xff]   ;;  %v4605_v59 = vld [vmem:[#allocation3 + $0x340] ss:$16 sps:$4 sm:$0xff]  }
  0x41   :  { %v4606_v60 = vld [vmem:[#allocation3 + $0x124] ss:$16 sps:$4 sm:$0xff]   ;;  %v4610_v62 = vld [vmem:[#allocation3 + $0x120] ss:$16 sps:$4 sm:$0xff]  }
  0x42   :  { %1664 = vmatpush1.bf16.msra.mxu0 %v4568_v30  ;;  %v4608_v61 = vld [vmem:[#allocation3 + $0x324] ss:$16 sps:$4 sm:$0xff]   ;;  %v4611_v63 = vld [vmem:[#allocation3 + $0x320] ss:$16 sps:$4 sm:$0xff]  }
  0x43   :  { %1705 = vmatpush1.bf16.msra.mxu1 %v4569_v31  ;;  %1665 = vmatprep.subr.bf16.mxu0 %v4570_v32  ;;  %v4612_v0 = vld [vmem:[#allocation3 + $0x104] ss:$16 sps:$4 sm:$0xff]   ;;  %v4616_v2 = vld [vmem:[#allocation3 + $0x100] ss:$16 sps:$4 sm:$0xff]  }
  0x44   :  { %1706 = vmatprep.subr.bf16.mxu1 %v4572_v33  ;;  %v4614_v1 = vld [vmem:[#allocation3 + $0x304] ss:$16 sps:$4 sm:$0xff]   ;;  %v4617_v3 = vld [vmem:[#allocation3 + $0x300] ss:$16 sps:$4 sm:$0xff]   ;;  %v5457_v33 = vld [vmem:[%s5599_s0 + $0x18] sm:$0xff] }
  0x45   :  { %v4624_v4 = vld [vmem:[#allocation3 + $0x4e4] ss:$16 sps:$4 sm:$0xff]   ;;  %v4622_v8 = vld [vmem:[#allocation3 + $0x4e0] ss:$16 sps:$4 sm:$0xff]  }
  0x46   :  { %1666 = vmatpush2.bf16.msra.mxu0 %v4574_v34  ;;  %v4627_v5 = vld [vmem:[#allocation3 + $0x6e4] ss:$16 sps:$4 sm:$0xff]   ;;  %v4625_v9 = vld [vmem:[#allocation3 + $0x6e0] ss:$16 sps:$4 sm:$0xff]  }
  0x47   :  { %1707 = vmatpush2.bf16.msra.mxu1 %v4575_v35  ;;  %1667 = vmatprep.subr.bf16.mxu0 %v4576_v36  ;;  %v4630_v10 = vld [vmem:[#allocation3 + $0x4c4] ss:$16 sps:$4 sm:$0xff]   ;;  %v4628_v12 = vld [vmem:[#allocation3 + $0x4c0] ss:$16 sps:$4 sm:$0xff]  }
  0x48   :  { %1708 = vmatprep.subr.bf16.mxu1 %v4578_v37  ;;  %v4633_v11 = vld [vmem:[#allocation3 + $0x6c4] ss:$16 sps:$4 sm:$0xff]   ;;  %v4631_v13 = vld [vmem:[#allocation3 + $0x6c0] ss:$16 sps:$4 sm:$0xff]   ;;  %v5465_v37 = vcombine.high %v5457_v33, %v5457_v33 }
  0x49   :  { %v4636_v14 = vld [vmem:[#allocation3 + $0x4a4] ss:$16 sps:$4 sm:$0xff]   ;;  %v4634_v16 = vld [vmem:[#allocation3 + $0x4a0] ss:$16 sps:$4 sm:$0xff]  }
  0x4a   :  { %1668 = vmatpush2.bf16.msra.mxu0 %v4580_v38  ;;  %v4639_v15 = vld [vmem:[#allocation3 + $0x6a4] ss:$16 sps:$4 sm:$0xff]   ;;  %v4637_v17 = vld [vmem:[#allocation3 + $0x6a0] ss:$16 sps:$4 sm:$0xff]  }
  0x4b   :  { %1709 = vmatpush2.bf16.msra.mxu1 %v4581_v39  ;;  %1669 = vmatprep.subr.bf16.mxu0 %v4582_v40  ;;  %v4642_v18 = vld [vmem:[#allocation3 + $0x484] ss:$16 sps:$4 sm:$0xff]   ;;  %v4640_v20 = vld [vmem:[#allocation3 + $0x480] ss:$16 sps:$4 sm:$0xff]  }
  0x4c   :  { %1710 = vmatprep.subr.bf16.mxu1 %v4584_v41  ;;  %v4645_v19 = vld [vmem:[#allocation3 + $0x684] ss:$16 sps:$4 sm:$0xff]   ;;  %v4643_v21 = vld [vmem:[#allocation3 + $0x680] ss:$16 sps:$4 sm:$0xff]  }
  0x4d   :  { %v4648_v22 = vld [vmem:[#allocation3 + $0x464] ss:$16 sps:$4 sm:$0xff]   ;;  %v4646_v24 = vld [vmem:[#allocation3 + $0x460] ss:$16 sps:$4 sm:$0xff]  }
  0x4e   :  { %1670 = vmatpush2.bf16.msra.mxu0 %v4586_v42  ;;  %v4651_v23 = vld [vmem:[#allocation3 + $0x664] ss:$16 sps:$4 sm:$0xff]   ;;  %v4649_v25 = vld [vmem:[#allocation3 + $0x660] ss:$16 sps:$4 sm:$0xff]  }
  0x4f   :  { %1711 = vmatpush2.bf16.msra.mxu1 %v4587_v43  ;;  %1671 = vmatprep.subr.bf16.mxu0 %v4588_v44  ;;  %v4654_v26 = vld [vmem:[#allocation3 + $0x444] ss:$16 sps:$4 sm:$0xff]   ;;  %v4652_v28 = vld [vmem:[#allocation3 + $0x440] ss:$16 sps:$4 sm:$0xff]  }
  0x50   :  { %1712 = vmatprep.subr.bf16.mxu1 %v4590_v45  ;;  %v4657_v27 = vld [vmem:[#allocation3 + $0x644] ss:$16 sps:$4 sm:$0xff]   ;;  %v4655_v29 = vld [vmem:[#allocation3 + $0x640] ss:$16 sps:$4 sm:$0xff]  }
  0x51   :  { %v4660_v30 = vld [vmem:[#allocation3 + $0x424] ss:$16 sps:$4 sm:$0xff]   ;;  %v4658_v34 = vld [vmem:[#allocation3 + $0x420] ss:$16 sps:$4 sm:$0xff]  }
  0x52   :  { %1672 = vmatpush2.bf16.msra.mxu0 %v4592_v49  ;;  %v4663_v31 = vld [vmem:[#allocation3 + $0x624] ss:$16 sps:$4 sm:$0xff]   ;;  %v4661_v35 = vld [vmem:[#allocation3 + $0x620] ss:$16 sps:$4 sm:$0xff]  }
  0x53   :  { %1713 = vmatpush2.bf16.msra.mxu1 %v4593_v50  ;;  %1673 = vmatprep.subr.bf16.mxu0 %v4594_v52  ;;  %v5452_v32 = vld [vmem:[%s5599_s0 + $0x10] sm:$0xff] }
  0x54   :  { %1714 = vmatprep.subr.bf16.mxu1 %v4596_v53  ;;  %v5461_v36 = vcombine.high %v5452_v32, %v5452_v32  ;;  %v4666_v38 = vld [vmem:[#allocation3 + $0x404] ss:$16 sps:$4 sm:$0xff]   ;;  %v4664_v40 = vld [vmem:[#allocation3 + $0x400] ss:$16 sps:$4 sm:$0xff]  }
  0x55   :  { %v4669_v39 = vld [vmem:[#allocation3 + $0x604] ss:$16 sps:$4 sm:$0xff]   ;;  %v4667_v41 = vld [vmem:[#allocation3 + $0x600] ss:$16 sps:$4 sm:$0xff]  }
  0x56   :  { %1674 = vmatpush2.bf16.msra.mxu0 %v4598_v54  ;;  %v4672_v42 = vld [vmem:[#allocation3 + $0x5e4] ss:$16 sps:$4 sm:$0xff]   ;;  %v4670_v44 = vld [vmem:[#allocation3 + $0x5e0] ss:$16 sps:$4 sm:$0xff]  }
  0x57   :  { %1715 = vmatpush2.bf16.msra.mxu1 %v4599_v55  ;;  %1675 = vmatprep.subr.bf16.mxu0 %v4600_v56  ;;  %v4675_v43 = vld [vmem:[#allocation3 + $0x7e4] ss:$16 sps:$4 sm:$0xff]   ;;  %v4673_v45 = vld [vmem:[#allocation3 + $0x7e0] ss:$16 sps:$4 sm:$0xff]  }
  0x58   :  { %1716 = vmatprep.subr.bf16.mxu1 %v4602_v57  ;;  %v4678_v46 = vld [vmem:[#allocation3 + $0x5c4] ss:$16 sps:$4 sm:$0xff]   ;;  %v4676_v49 = vld [vmem:[#allocation3 + $0x5c0] ss:$16 sps:$4 sm:$0xff]  }
  0x59   :  { %v4681_v48 = vld [vmem:[#allocation3 + $0x7c4] ss:$16 sps:$4 sm:$0xff]   ;;  %v4679_v50 = vld [vmem:[#allocation3 + $0x7c0] ss:$16 sps:$4 sm:$0xff]  }
  0x5a   :  { %1676 = vmatpush2.bf16.msra.mxu0 %v4604_v58  ;;  %v4684_v52 = vld [vmem:[#allocation3 + $0x5a4] ss:$16 sps:$4 sm:$0xff]   ;;  %v4682_v54 = vld [vmem:[#allocation3 + $0x5a0] ss:$16 sps:$4 sm:$0xff]  }
  0x5b   :  { %1717 = vmatpush2.bf16.msra.mxu1 %v4605_v59  ;;  %1677 = vmatprep.subr.bf16.mxu0 %v4606_v60  ;;  %v4687_v53 = vld [vmem:[#allocation3 + $0x7a4] ss:$16 sps:$4 sm:$0xff]   ;;  %v4685_v55 = vld [vmem:[#allocation3 + $0x7a0] ss:$16 sps:$4 sm:$0xff]  }
  0x5c   :  { %1718 = vmatprep.subr.bf16.mxu1 %v4608_v61  ;;  %v4690_v56 = vld [vmem:[#allocation3 + $0x584] ss:$16 sps:$4 sm:$0xff]   ;;  %v4688_v58 = vld [vmem:[#allocation3 + $0x580] ss:$16 sps:$4 sm:$0xff]  }
  0x5d   :  { %v4693_v57 = vld [vmem:[#allocation3 + $0x784] ss:$16 sps:$4 sm:$0xff]   ;;  %v4691_v59 = vld [vmem:[#allocation3 + $0x780] ss:$16 sps:$4 sm:$0xff]  }
  0x5e   :  { %1678 = vmatpush2.bf16.msra.mxu0 %v4610_v62  ;;  %v4696_v60 = vld [vmem:[#allocation3 + $0x564] ss:$16 sps:$4 sm:$0xff]   ;;  %v4694_v62 = vld [vmem:[#allocation3 + $0x560] ss:$16 sps:$4 sm:$0xff]  }
  0x5f   :  { %1719 = vmatpush2.bf16.msra.mxu1 %v4611_v63  ;;  %1679 = vmatprep.subr.bf16.mxu0 %v4612_v0  ;;  %v4699_v61 = vld [vmem:[#allocation3 + $0x764] ss:$16 sps:$4 sm:$0xff]   ;;  %v4697_v63 = vld [vmem:[#allocation3 + $0x760] ss:$16 sps:$4 sm:$0xff]  }
  0x60   :  { %1720 = vmatprep.subr.bf16.mxu1 %v4614_v1  ;;  %v4702_v0 = vld [vmem:[#allocation3 + $0x544] ss:$16 sps:$4 sm:$0xff]  }
  0x61   :  { %v4705_v1 = vld [vmem:[#allocation3 + $0x744] ss:$16 sps:$4 sm:$0xff]  }
  0x62   :  { %1680 = vmatpush2.bf16.msra.mxu0 %v4616_v2  ;;  %v4700_v2 = vld [vmem:[#allocation3 + $0x540] ss:$16 sps:$4 sm:$0xff]  }
  0x63   :  { %1721 = vmatpush2.bf16.msra.mxu1 %v4617_v3  ;;  %1731 = vmatprep.subr.bf16.mxu0 %v4624_v4  ;;  %v4703_v3 = vld [vmem:[#allocation3 + $0x740] ss:$16 sps:$4 sm:$0xff]   ;;  %v4708_v4 = vld [vmem:[#allocation3 + $0x524] ss:$16 sps:$4 sm:$0xff]  }
  0x64   :  { %1772 = vmatprep.subr.bf16.mxu1 %v4627_v5  ;;  %v4711_v5 = vld [vmem:[#allocation3 + $0x724] ss:$16 sps:$4 sm:$0xff]  }
  0x65   :  { %1682 = vmatmul.mubr.bf16.vlgmr.msra.gmra.mxu0 %v5443_v6 }
  0x66   :  { %1723 = vmatmul.mubr.bf16.vlgmr.msra.gmra.mxu1 %v5445_v7  ;;  %1732 = vmatpush1.bf16.msra.mxu0 %v4622_v8  ;;  %v4706_v8 = vld [vmem:[#allocation3 + $0x520] ss:$16 sps:$4 sm:$0xff]  }
  0x67   :  { %1773 = vmatpush1.bf16.msra.mxu1 %v4625_v9  ;;  %1733 = vmatprep.subr.bf16.mxu0 %v4630_v10  ;;  %v4709_v9 = vld [vmem:[#allocation3 + $0x720] ss:$16 sps:$4 sm:$0xff]   ;;  %v4714_v10 = vld [vmem:[#allocation3 + $0x504] ss:$16 sps:$4 sm:$0xff]  }
  0x68   :  { %1774 = vmatprep.subr.bf16.mxu1 %v4633_v11  ;;  %1763 = vmatprep.mubr.bf16.mxu0 %v5461_v36  ;;  %v4717_v11 = vld [vmem:[#allocation3 + $0x704] ss:$16 sps:$4 sm:$0xff]  }
  0x69   :  { %1804 = vmatprep.mubr.bf16.mxu1 %v5465_v37 }
  0x6a   :  { %1734 = vmatpush1.bf16.msra.mxu0 %v4628_v12  ;;  %v4712_v12 = vld [vmem:[#allocation3 + $0x500] ss:$16 sps:$4 sm:$0xff]  }
  0x6b   :  { %1775 = vmatpush1.bf16.msra.mxu1 %v4631_v13  ;;  %1735 = vmatprep.subr.bf16.mxu0 %v4636_v14  ;;  %v4715_v13 = vld [vmem:[#allocation3 + $0x700] ss:$16 sps:$4 sm:$0xff]   ;;  %v4724_v14 = vld [vmem:[#allocation3 + $0xec] ss:$16 sps:$4 sm:$0xff]  }
  0x6c   :  { %1776 = vmatprep.subr.bf16.mxu1 %v4639_v15  ;;  %v4727_v15 = vld [vmem:[#allocation3 + $0x2ec] ss:$16 sps:$4 sm:$0xff]  }
  0x6e   :  { %1736 = vmatpush1.bf16.msra.mxu0 %v4634_v16  ;;  %v5471_v16 = vcombine.low %v5452_v32, %v5452_v32  ;;  %v4748_v32 = vld [vmem:[#allocation3 + $0x6c] ss:$16 sps:$4 sm:$0xff]  }
  0x6f   :  { %1777 = vmatpush1.bf16.msra.mxu1 %v4637_v17  ;;  %1737 = vmatprep.subr.bf16.mxu0 %v4642_v18  ;;  %v5475_v17 = vcombine.low %v5457_v33, %v5457_v33  ;;  %v4722_v18 = vld [vmem:[#allocation3 + $0xe8] ss:$16 sps:$4 sm:$0xff]   ;;  %v4751_v33 = vld [vmem:[#allocation3 + $0x26c] ss:$16 sps:$4 sm:$0xff]  }
  0x70   :  { %1778 = vmatprep.subr.bf16.mxu1 %v4645_v19  ;;  %v4725_v19 = vld [vmem:[#allocation3 + $0x2e8] ss:$16 sps:$4 sm:$0xff]  }
  0x72   :  { %1738 = vmatpush1.bf16.msra.mxu0 %v4640_v20  ;;  %v4730_v20 = vld [vmem:[#allocation3 + $0xcc] ss:$16 sps:$4 sm:$0xff]  }
  0x73   :  { %1779 = vmatpush1.bf16.msra.mxu1 %v4643_v21  ;;  %1739 = vmatprep.subr.bf16.mxu0 %v4648_v22  ;;  %v4733_v21 = vld [vmem:[#allocation3 + $0x2cc] ss:$16 sps:$4 sm:$0xff]   ;;  %v4728_v22 = vld [vmem:[#allocation3 + $0xc8] ss:$16 sps:$4 sm:$0xff]  }
  0x74   :  { %1780 = vmatprep.subr.bf16.mxu1 %v4651_v23  ;;  %v4731_v23 = vld [vmem:[#allocation3 + $0x2c8] ss:$16 sps:$4 sm:$0xff]  }
  0x76   :  { %1740 = vmatpush1.bf16.msra.mxu0 %v4646_v24  ;;  %v4736_v24 = vld [vmem:[#allocation3 + $0xac] ss:$16 sps:$4 sm:$0xff]  }
  0x77   :  { %1781 = vmatpush1.bf16.msra.mxu1 %v4649_v25  ;;  %1741 = vmatprep.subr.bf16.mxu0 %v4654_v26  ;;  %v4739_v25 = vld [vmem:[#allocation3 + $0x2ac] ss:$16 sps:$4 sm:$0xff]   ;;  %v4734_v26 = vld [vmem:[#allocation3 + $0xa8] ss:$16 sps:$4 sm:$0xff]  }
  0x78   :  { %1782 = vmatprep.subr.bf16.mxu1 %v4657_v27  ;;  %v4737_v27 = vld [vmem:[#allocation3 + $0x2a8] ss:$16 sps:$4 sm:$0xff]  }
  0x7a   :  { %1742 = vmatpush1.bf16.msra.mxu0 %v4652_v28  ;;  %v4742_v28 = vld [vmem:[#allocation3 + $0x8c] ss:$16 sps:$4 sm:$0xff]  }
  0x7b   :  { %1783 = vmatpush1.bf16.msra.mxu1 %v4655_v29  ;;  %1743 = vmatprep.subr.bf16.mxu0 %v4660_v30  ;;  %v4745_v29 = vld [vmem:[#allocation3 + $0x28c] ss:$16 sps:$4 sm:$0xff]   ;;  %v4740_v30 = vld [vmem:[#allocation3 + $0x88] ss:$16 sps:$4 sm:$0xff]  }
  0x7c   :  { %1784 = vmatprep.subr.bf16.mxu1 %v4663_v31  ;;  %v4743_v31 = vld [vmem:[#allocation3 + $0x288] ss:$16 sps:$4 sm:$0xff]  }
  0x7e   :  { %1744 = vmatpush1.bf16.msra.mxu0 %v4658_v34  ;;  %v4746_v34 = vld [vmem:[#allocation3 + $0x68] ss:$16 sps:$4 sm:$0xff]  }
  0x7f   :  { %1785 = vmatpush1.bf16.msra.mxu1 %v4661_v35  ;;  %1745 = vmatprep.subr.bf16.mxu0 %v4666_v38  ;;  %v4757_v35 = vld [vmem:[#allocation3 + $0x24c] ss:$16 sps:$4 sm:$0xff]   ;;  %v4752_v38 = vld [vmem:[#allocation3 + $0x48] ss:$16 sps:$4 sm:$0xff]  }
  0x80   :  { %1786 = vmatprep.subr.bf16.mxu1 %v4669_v39  ;;  %v4755_v39 = vld [vmem:[#allocation3 + $0x248] ss:$16 sps:$4 sm:$0xff]  }
  0x82   :  { %1746 = vmatpush1.bf16.msra.mxu0 %v4664_v40  ;;  %v4760_v40 = vld [vmem:[#allocation3 + $0x2c] ss:$16 sps:$4 sm:$0xff]  }
  0x83   :  { %1787 = vmatpush1.bf16.msra.mxu1 %v4667_v41  ;;  %1747 = vmatprep.subr.bf16.mxu0 %v4672_v42  ;;  %v4763_v41 = vld [vmem:[#allocation3 + $0x22c] ss:$16 sps:$4 sm:$0xff]   ;;  %v4758_v42 = vld [vmem:[#allocation3 + $0x28] ss:$16 sps:$4 sm:$0xff]  }
  0x84   :  { %1788 = vmatprep.subr.bf16.mxu1 %v4675_v43  ;;  %v4761_v43 = vld [vmem:[#allocation3 + $0x228] ss:$16 sps:$4 sm:$0xff]  }
  0x86   :  { %1748 = vmatpush2.bf16.msra.mxu0 %v4670_v44  ;;  %v4766_v44 = vld [vmem:[#allocation3 + $0xc] ss:$16 sps:$4 sm:$0xff]  }
  0x87   :  { %1789 = vmatpush2.bf16.msra.mxu1 %v4673_v45  ;;  %1749 = vmatprep.subr.bf16.mxu0 %v4678_v46  ;;  %v4769_v45 = vld [vmem:[#allocation3 + $0x20c] ss:$16 sps:$4 sm:$0xff]   ;;  %v4764_v46 = vld [vmem:[#allocation3 + $0x8] ss:$16 sps:$4 sm:$0xff]  }
  0x88   :  { %1790 = vmatprep.subr.bf16.mxu1 %v4681_v48  ;;  %v4767_v48 = vld [vmem:[#allocation3 + $0x208] ss:$16 sps:$4 sm:$0xff]  }
  0x8a   :  { %1750 = vmatpush2.bf16.msra.mxu0 %v4676_v49  ;;  %v4772_v49 = vld [vmem:[#allocation3 + $0x1ec] ss:$16 sps:$4 sm:$0xff]  }
  0x8b   :  { %1791 = vmatpush2.bf16.msra.mxu1 %v4679_v50  ;;  %1751 = vmatprep.subr.bf16.mxu0 %v4684_v52  ;;  %v4775_v50 = vld [vmem:[#allocation3 + $0x3ec] ss:$16 sps:$4 sm:$0xff]   ;;  %v4770_v52 = vld [vmem:[#allocation3 + $0x1e8] ss:$16 sps:$4 sm:$0xff]  }
  0x8c   :  { %1792 = vmatprep.subr.bf16.mxu1 %v4687_v53  ;;  %v4773_v53 = vld [vmem:[#allocation3 + $0x3e8] ss:$16 sps:$4 sm:$0xff]  }
  0x8e   :  { %1752 = vmatpush2.bf16.msra.mxu0 %v4682_v54  ;;  %v4778_v54 = vld [vmem:[#allocation3 + $0x1cc] ss:$16 sps:$4 sm:$0xff]  }
  0x8f   :  { %1793 = vmatpush2.bf16.msra.mxu1 %v4685_v55  ;;  %1753 = vmatprep.subr.bf16.mxu0 %v4690_v56  ;;  %v4781_v55 = vld [vmem:[#allocation3 + $0x3cc] ss:$16 sps:$4 sm:$0xff]   ;;  %v4776_v56 = vld [vmem:[#allocation3 + $0x1c8] ss:$16 sps:$4 sm:$0xff]  }
  0x90   :  { %1794 = vmatprep.subr.bf16.mxu1 %v4693_v57  ;;  %v4779_v57 = vld [vmem:[#allocation3 + $0x3c8] ss:$16 sps:$4 sm:$0xff]  }
  0x92   :  { %1754 = vmatpush2.bf16.msra.mxu0 %v4688_v58  ;;  %v4784_v58 = vld [vmem:[#allocation3 + $0x1ac] ss:$16 sps:$4 sm:$0xff]  }
  0x93   :  { %1795 = vmatpush2.bf16.msra.mxu1 %v4691_v59  ;;  %1755 = vmatprep.subr.bf16.mxu0 %v4696_v60  ;;  %v4787_v59 = vld [vmem:[#allocation3 + $0x3ac] ss:$16 sps:$4 sm:$0xff]   ;;  %v4782_v60 = vld [vmem:[#allocation3 + $0x1a8] ss:$16 sps:$4 sm:$0xff]  }
  0x94   :  { %1796 = vmatprep.subr.bf16.mxu1 %v4699_v61  ;;  %v4785_v61 = vld [vmem:[#allocation3 + $0x3a8] ss:$16 sps:$4 sm:$0xff]  }
  0x96   :  { %1756 = vmatpush2.bf16.msra.mxu0 %v4694_v62  ;;  %v4790_v62 = vld [vmem:[#allocation3 + $0x18c] ss:$16 sps:$4 sm:$0xff]  }
  0x97   :  { %1797 = vmatpush2.bf16.msra.mxu1 %v4697_v63  ;;  %1757 = vmatprep.subr.bf16.mxu0 %v4702_v0  ;;  %v4793_v63 = vld [vmem:[#allocation3 + $0x38c] ss:$16 sps:$4 sm:$0xff]   ;;  %v4788_v0 = vld [vmem:[#allocation3 + $0x188] ss:$16 sps:$4 sm:$0xff]  }
  0x98   :  { %1798 = vmatprep.subr.bf16.mxu1 %v4705_v1  ;;  %v4791_v1 = vld [vmem:[#allocation3 + $0x388] ss:$16 sps:$4 sm:$0xff]  }
  0x9a   :  { %1758 = vmatpush2.bf16.msra.mxu0 %v4700_v2  ;;  %v4796_v2 = vld [vmem:[#allocation3 + $0x16c] ss:$16 sps:$4 sm:$0xff]  }
  0x9b   :  { %1799 = vmatpush2.bf16.msra.mxu1 %v4703_v3  ;;  %1759 = vmatprep.subr.bf16.mxu0 %v4708_v4  ;;  %v4799_v3 = vld [vmem:[#allocation3 + $0x36c] ss:$16 sps:$4 sm:$0xff]   ;;  %v4794_v4 = vld [vmem:[#allocation3 + $0x168] ss:$16 sps:$4 sm:$0xff]  }
  0x9c   :  { %1800 = vmatprep.subr.bf16.mxu1 %v4711_v5  ;;  %v4797_v5 = vld [vmem:[#allocation3 + $0x368] ss:$16 sps:$4 sm:$0xff]  }
  0x9e   :  { %1760 = vmatpush2.bf16.msra.mxu0 %v4706_v8  ;;  %v4802_v8 = vld [vmem:[#allocation3 + $0x14c] ss:$16 sps:$4 sm:$0xff]  }
  0x9f   :  { %1801 = vmatpush2.bf16.msra.mxu1 %v4709_v9  ;;  %1761 = vmatprep.subr.bf16.mxu0 %v4714_v10  ;;  %v4805_v9 = vld [vmem:[#allocation3 + $0x34c] ss:$16 sps:$4 sm:$0xff]   ;;  %v4800_v10 = vld [vmem:[#allocation3 + $0x148] ss:$16 sps:$4 sm:$0xff]  }
  0xa0   :  { %1802 = vmatprep.subr.bf16.mxu1 %v4717_v11  ;;  %v4803_v11 = vld [vmem:[#allocation3 + $0x348] ss:$16 sps:$4 sm:$0xff]  }
  0xa2   :  { %1762 = vmatpush2.bf16.msra.mxu0 %v4712_v12  ;;  %v4808_v12 = vld [vmem:[#allocation3 + $0x12c] ss:$16 sps:$4 sm:$0xff]  }
  0xa3   :  { %1803 = vmatpush2.bf16.msra.mxu1 %v4715_v13  ;;  %1813 = vmatprep.subr.bf16.mxu0 %v4724_v14  ;;  %v4811_v13 = vld [vmem:[#allocation3 + $0x32c] ss:$16 sps:$4 sm:$0xff]   ;;  %v4806_v14 = vld [vmem:[#allocation3 + $0x128] ss:$16 sps:$4 sm:$0xff]  }
  0xa4   :  { %1854 = vmatprep.subr.bf16.mxu1 %v4727_v15  ;;  %v4809_v15 = vld [vmem:[#allocation3 + $0x328] ss:$16 sps:$4 sm:$0xff]  }
  0xa5   :  { %1764 = vmatmul.mubr.bf16.vlgmr.msra.gmra.mxu0 %v5471_v16 }
  0xa6   :  { %1805 = vmatmul.mubr.bf16.vlgmr.msra.gmra.mxu1 %v5475_v17  ;;  %1814 = vmatpush1.bf16.msra.mxu0 %v4722_v18  ;;  %v4814_v18 = vld [vmem:[#allocation3 + $0x10c] ss:$16 sps:$4 sm:$0xff]  }
  0xa7   :  { %1855 = vmatpush1.bf16.msra.mxu1 %v4725_v19  ;;  %1815 = vmatprep.subr.bf16.mxu0 %v4730_v20  ;;  %v4817_v19 = vld [vmem:[#allocation3 + $0x30c] ss:$16 sps:$4 sm:$0xff]   ;;  %v4812_v20 = vld [vmem:[#allocation3 + $0x108] ss:$16 sps:$4 sm:$0xff]  }
  0xa8   :  { %1856 = vmatprep.subr.bf16.mxu1 %v4733_v21  ;;  %1845 = vmatprep.mubr.bf16.mxu0 %v5434_v47  ;;  %v4749_v47 = vld [vmem:[#allocation3 + $0x268] ss:$16 sps:$4 sm:$0xff]  }
  0xa9   :  { %1886 = vmatprep.mubr.bf16.mxu1 %v5439_v51  ;;  %v4754_v51 = vld [vmem:[#allocation3 + $0x4c] ss:$16 sps:$4 sm:$0xff]   ;;  %v4815_v21 = vld [vmem:[#allocation3 + $0x308] ss:$16 sps:$4 sm:$0xff]  }
  0xaa   :  { %1816 = vmatpush1.bf16.msra.mxu0 %v4728_v22  ;;  %v4820_v22 = vld [vmem:[#allocation3 + $0x4ec] ss:$16 sps:$4 sm:$0xff]  }
  0xab   :  { %1857 = vmatpush1.bf16.msra.mxu1 %v4731_v23  ;;  %1817 = vmatprep.subr.bf16.mxu0 %v4736_v24  ;;  %v4823_v23 = vld [vmem:[#allocation3 + $0x6ec] ss:$16 sps:$4 sm:$0xff]   ;;  %v4818_v24 = vld [vmem:[#allocation3 + $0x4e8] ss:$16 sps:$4 sm:$0xff]  }
  0xac   :  { %1858 = vmatprep.subr.bf16.mxu1 %v4739_v25  ;;  %v4821_v25 = vld [vmem:[#allocation3 + $0x6e8] ss:$16 sps:$4 sm:$0xff]  }
  0xae   :  { %1818 = vmatpush1.bf16.msra.mxu0 %v4734_v26  ;;  %v4826_v26 = vld [vmem:[#allocation3 + $0x4cc] ss:$16 sps:$4 sm:$0xff]  }
  0xaf   :  { %1859 = vmatpush1.bf16.msra.mxu1 %v4737_v27  ;;  %1819 = vmatprep.subr.bf16.mxu0 %v4742_v28  ;;  %v4829_v27 = vld [vmem:[#allocation3 + $0x6cc] ss:$16 sps:$4 sm:$0xff]   ;;  %v4824_v28 = vld [vmem:[#allocation3 + $0x4c8] ss:$16 sps:$4 sm:$0xff]  }
  0xb0   :  { %1860 = vmatprep.subr.bf16.mxu1 %v4745_v29  ;;  %v4827_v29 = vld [vmem:[#allocation3 + $0x6c8] ss:$16 sps:$4 sm:$0xff]  }
  0xb2   :  { %1820 = vmatpush1.bf16.msra.mxu0 %v4740_v30  ;;  %v4832_v30 = vld [vmem:[#allocation3 + $0x4ac] ss:$16 sps:$4 sm:$0xff]  }
  0xb3   :  { %1861 = vmatpush1.bf16.msra.mxu1 %v4743_v31  ;;  %1821 = vmatprep.subr.bf16.mxu0 %v4748_v32  ;;  %v4835_v31 = vld [vmem:[#allocation3 + $0x6ac] ss:$16 sps:$4 sm:$0xff]   ;;  %v4830_v32 = vld [vmem:[#allocation3 + $0x4a8] ss:$16 sps:$4 sm:$0xff]  }
  0xb4   :  { %1862 = vmatprep.subr.bf16.mxu1 %v4751_v33  ;;  %v4833_v33 = vld [vmem:[#allocation3 + $0x6a8] ss:$16 sps:$4 sm:$0xff]  }
  0xb6   :  { %1822 = vmatpush1.bf16.msra.mxu0 %v4746_v34  ;;  %v4838_v34 = vld [vmem:[#allocation3 + $0x48c] ss:$16 sps:$4 sm:$0xff]  }
  0xb7   :  { %1863 = vmatpush1.bf16.msra.mxu1 %v4749_v47  ;;  %1823 = vmatprep.subr.bf16.mxu0 %v4754_v51  ;;  %v4841_v47 = vld [vmem:[#allocation3 + $0x68c] ss:$16 sps:$4 sm:$0xff]  }
  0xb8   :  { %1864 = vmatprep.subr.bf16.mxu1 %v4757_v35  ;;  %v4844_v51 = vld [vmem:[#allocation3 + $0x46c] ss:$16 sps:$4 sm:$0xff]  }
  0xb9   :  { %v4847_v35 = vld [vmem:[#allocation3 + $0x66c] ss:$16 sps:$4 sm:$0xff]  }
  0xba   :  { %1824 = vmatpush1.bf16.msra.mxu0 %v4752_v38  ;;  %v4842_v38 = vld [vmem:[#allocation3 + $0x468] ss:$16 sps:$4 sm:$0xff]  }
  0xbb   :  { %1865 = vmatpush1.bf16.msra.mxu1 %v4755_v39  ;;  %1825 = vmatprep.subr.bf16.mxu0 %v4760_v40  ;;  %v4845_v39 = vld [vmem:[#allocation3 + $0x668] ss:$16 sps:$4 sm:$0xff]   ;;  %v4850_v40 = vld [vmem:[#allocation3 + $0x44c] ss:$16 sps:$4 sm:$0xff]  }
  0xbc   :  { %1866 = vmatprep.subr.bf16.mxu1 %v4763_v41  ;;  %v4851_v41 = vld [vmem:[#allocation3 + $0x648] ss:$16 sps:$4 sm:$0xff]  }
  0xbe   :  { %1826 = vmatpush1.bf16.msra.mxu0 %v4758_v42  ;;  %v4856_v42 = vld [vmem:[#allocation3 + $0x42c] ss:$16 sps:$4 sm:$0xff]  }
  0xbf   :  { %1867 = vmatpush1.bf16.msra.mxu1 %v4761_v43  ;;  %1827 = vmatprep.subr.bf16.mxu0 %v4766_v44  ;;  %v4859_v43 = vld [vmem:[#allocation3 + $0x62c] ss:$16 sps:$4 sm:$0xff]   ;;  %v4854_v44 = vld [vmem:[#allocation3 + $0x428] ss:$16 sps:$4 sm:$0xff]  }
  0xc0   :  { %1868 = vmatprep.subr.bf16.mxu1 %v4769_v45  ;;  %v4857_v45 = vld [vmem:[#allocation3 + $0x628] ss:$16 sps:$4 sm:$0xff]  }
  0xc2   :  { %1828 = vmatpush1.bf16.msra.mxu0 %v4764_v46  ;;  %v4862_v46 = vld [vmem:[#allocation3 + $0x40c] ss:$16 sps:$4 sm:$0xff]  }
  0xc3   :  { %1869 = vmatpush1.bf16.msra.mxu1 %v4767_v48  ;;  %1829 = vmatprep.subr.bf16.mxu0 %v4772_v49  ;;  %v4865_v48 = vld [vmem:[#allocation3 + $0x60c] ss:$16 sps:$4 sm:$0xff]   ;;  %v4860_v49 = vld [vmem:[#allocation3 + $0x408] ss:$16 sps:$4 sm:$0xff]  }
  0xc4   :  { %1870 = vmatprep.subr.bf16.mxu1 %v4775_v50  ;;  %v4863_v50 = vld [vmem:[#allocation3 + $0x608] ss:$16 sps:$4 sm:$0xff]  }
  0xc6   :  { %1830 = vmatpush2.bf16.msra.mxu0 %v4770_v52  ;;  %v4868_v52 = vld [vmem:[#allocation3 + $0x5ec] ss:$16 sps:$4 sm:$0xff]  }
  0xc7   :  { %1871 = vmatpush2.bf16.msra.mxu1 %v4773_v53  ;;  %1831 = vmatprep.subr.bf16.mxu0 %v4778_v54  ;;  %v4871_v53 = vld [vmem:[#allocation3 + $0x7ec] ss:$16 sps:$4 sm:$0xff]   ;;  %v4866_v54 = vld [vmem:[#allocation3 + $0x5e8] ss:$16 sps:$4 sm:$0xff]  }
  0xc8   :  { %1872 = vmatprep.subr.bf16.mxu1 %v4781_v55  ;;  %v4869_v55 = vld [vmem:[#allocation3 + $0x7e8] ss:$16 sps:$4 sm:$0xff]  }
  0xca   :  { %1832 = vmatpush2.bf16.msra.mxu0 %v4776_v56  ;;  %v4874_v56 = vld [vmem:[#allocation3 + $0x5cc] ss:$16 sps:$4 sm:$0xff]  }
  0xcb   :  { %1873 = vmatpush2.bf16.msra.mxu1 %v4779_v57  ;;  %1833 = vmatprep.subr.bf16.mxu0 %v4784_v58  ;;  %v4877_v57 = vld [vmem:[#allocation3 + $0x7cc] ss:$16 sps:$4 sm:$0xff]   ;;  %v4872_v58 = vld [vmem:[#allocation3 + $0x5c8] ss:$16 sps:$4 sm:$0xff]  }
  0xcc   :  { %1874 = vmatprep.subr.bf16.mxu1 %v4787_v59  ;;  %v4875_v59 = vld [vmem:[#allocation3 + $0x7c8] ss:$16 sps:$4 sm:$0xff]  }
  0xce   :  { %1834 = vmatpush2.bf16.msra.mxu0 %v4782_v60  ;;  %v4880_v60 = vld [vmem:[#allocation3 + $0x5ac] ss:$16 sps:$4 sm:$0xff]  }
  0xcf   :  { %1875 = vmatpush2.bf16.msra.mxu1 %v4785_v61  ;;  %1835 = vmatprep.subr.bf16.mxu0 %v4790_v62  ;;  %v4883_v61 = vld [vmem:[#allocation3 + $0x7ac] ss:$16 sps:$4 sm:$0xff]   ;;  %v4878_v62 = vld [vmem:[#allocation3 + $0x5a8] ss:$16 sps:$4 sm:$0xff]  }
  0xd0   :  { %1876 = vmatprep.subr.bf16.mxu1 %v4793_v63  ;;  %v4881_v63 = vld [vmem:[#allocation3 + $0x7a8] ss:$16 sps:$4 sm:$0xff]  }
  0xd2   :  { %1836 = vmatpush2.bf16.msra.mxu0 %v4788_v0  ;;  %v4886_v0 = vld [vmem:[#allocation3 + $0x58c] ss:$16 sps:$4 sm:$0xff]  }
  0xd3   :  { %1877 = vmatpush2.bf16.msra.mxu1 %v4791_v1  ;;  %1837 = vmatprep.subr.bf16.mxu0 %v4796_v2  ;;  %v4889_v1 = vld [vmem:[#allocation3 + $0x78c] ss:$16 sps:$4 sm:$0xff]   ;;  %v4884_v2 = vld [vmem:[#allocation3 + $0x588] ss:$16 sps:$4 sm:$0xff]  }
  0xd4   :  { %1878 = vmatprep.subr.bf16.mxu1 %v4799_v3  ;;  %v4887_v3 = vld [vmem:[#allocation3 + $0x788] ss:$16 sps:$4 sm:$0xff]  }
  0xd6   :  { %1838 = vmatpush2.bf16.msra.mxu0 %v4794_v4  ;;  %v4892_v4 = vld [vmem:[#allocation3 + $0x56c] ss:$16 sps:$4 sm:$0xff]  }
  0xd7   :  { %1879 = vmatpush2.bf16.msra.mxu1 %v4797_v5  ;;  %1839 = vmatprep.subr.bf16.mxu0 %v4802_v8  ;;  %v4895_v5 = vld [vmem:[#allocation3 + $0x76c] ss:$16 sps:$4 sm:$0xff]   ;;  %v4890_v8 = vld [vmem:[#allocation3 + $0x568] ss:$16 sps:$4 sm:$0xff]  }
  0xd8   :  { %1880 = vmatprep.subr.bf16.mxu1 %v4805_v9  ;;  %v4893_v9 = vld [vmem:[#allocation3 + $0x768] ss:$16 sps:$4 sm:$0xff]  }
  0xda   :  { %1840 = vmatpush2.bf16.msra.mxu0 %v4800_v10  ;;  %v4898_v10 = vld [vmem:[#allocation3 + $0x54c] ss:$16 sps:$4 sm:$0xff]  }
  0xdb   :  { %1881 = vmatpush2.bf16.msra.mxu1 %v4803_v11  ;;  %1841 = vmatprep.subr.bf16.mxu0 %v4808_v12  ;;  %v4901_v11 = vld [vmem:[#allocation3 + $0x74c] ss:$16 sps:$4 sm:$0xff]   ;;  %v4896_v12 = vld [vmem:[#allocation3 + $0x548] ss:$16 sps:$4 sm:$0xff]  }
  0xdc   :  { %1882 = vmatprep.subr.bf16.mxu1 %v4811_v13  ;;  %v4899_v13 = vld [vmem:[#allocation3 + $0x748] ss:$16 sps:$4 sm:$0xff]  }
  0xde   :  { %1842 = vmatpush2.bf16.msra.mxu0 %v4806_v14  ;;  %v4904_v14 = vld [vmem:[#allocation3 + $0x52c] ss:$16 sps:$4 sm:$0xff]  }
  0xdf   :  { %1883 = vmatpush2.bf16.msra.mxu1 %v4809_v15  ;;  %1843 = vmatprep.subr.bf16.mxu0 %v4814_v18  ;;  %v4907_v15 = vld [vmem:[#allocation3 + $0x72c] ss:$16 sps:$4 sm:$0xff]   ;;  %v4902_v18 = vld [vmem:[#allocation3 + $0x528] ss:$16 sps:$4 sm:$0xff]  }
  0xe0   :  { %1884 = vmatprep.subr.bf16.mxu1 %v4817_v19  ;;  %v4905_v19 = vld [vmem:[#allocation3 + $0x728] ss:$16 sps:$4 sm:$0xff]  }
  0xe2   :  { %1844 = vmatpush2.bf16.msra.mxu0 %v4812_v20  ;;  %v4910_v20 = vld [vmem:[#allocation3 + $0x50c] ss:$16 sps:$4 sm:$0xff]  }
  0xe3   :  { %1885 = vmatpush2.bf16.msra.mxu1 %v4815_v21  ;;  %1895 = vmatprep.subr.bf16.mxu0 %v4820_v22  ;;  %v4913_v21 = vld [vmem:[#allocation3 + $0x70c] ss:$16 sps:$4 sm:$0xff]   ;;  %v4908_v22 = vld [vmem:[#allocation3 + $0x508] ss:$16 sps:$4 sm:$0xff]  }
  0xe4   :  { %1936 = vmatprep.subr.bf16.mxu1 %v4823_v23  ;;  %v4911_v23 = vld [vmem:[#allocation3 + $0x708] ss:$16 sps:$4 sm:$0xff]  }
  0xe5   :  { %1846 = vmatmul.mubr.bf16.vlgmr.msra.gmra.mxu0 %v5443_v6  ;;  %v4836_v6 = vld [vmem:[#allocation3 + $0x488] ss:$16 sps:$4 sm:$0xff]  }
  0xe6   :  { %1887 = vmatmul.mubr.bf16.vlgmr.msra.gmra.mxu1 %v5445_v7  ;;  %1896 = vmatpush1.bf16.msra.mxu0 %v4818_v24  ;;  %v4839_v7 = vld [vmem:[#allocation3 + $0x688] ss:$16 sps:$4 sm:$0xff]   ;;  %v4916_v24 = vld [vmem:[#allocation5 + $0xe4] ss:$16 sps:$4 sm:$0xff]  }
  0xe7   :  { %1937 = vmatpush1.bf16.msra.mxu1 %v4821_v25  ;;  %1897 = vmatprep.subr.bf16.mxu0 %v4826_v26  ;;  %v4914_v25 = vld [vmem:[#allocation5 + $0xe0] ss:$16 sps:$4 sm:$0xff]   ;;  %v4919_v26 = vld [vmem:[#allocation5 + $0xc4] ss:$16 sps:$4 sm:$0xff]  }
  0xe8   :  { %1938 = vmatprep.subr.bf16.mxu1 %v4829_v27  ;;  %1927 = vmatprep.mubr.bf16.mxu0 %v5461_v36  ;;  %v4853_v36 = vld [vmem:[#allocation3 + $0x64c] ss:$16 sps:$4 sm:$0xff]  }
  0xe9   :  { %1968 = vmatprep.mubr.bf16.mxu1 %v5465_v37  ;;  %v4848_v37 = vld [vmem:[#allocation3 + $0x448] ss:$16 sps:$4 sm:$0xff]  }
  0xea   :  { %1898 = vmatpush1.bf16.msra.mxu0 %v4824_v28 }
  0xeb   :  { %1939 = vmatpush1.bf16.msra.mxu1 %v4827_v29  ;;  %1899 = vmatprep.subr.bf16.mxu0 %v4832_v30  ;;  %v4917_v29 = vld [vmem:[#allocation5 + $0xc0] ss:$16 sps:$4 sm:$0xff]  }
  0xec   :  { %1940 = vmatprep.subr.bf16.mxu1 %v4835_v31 }
  0xee   :  { %1900 = vmatpush1.bf16.msra.mxu0 %v4830_v32  ;;  %v4922_v32 = vld [vmem:[#allocation5 + $0xa4] ss:$16 sps:$4 sm:$0xff]  }
  0xef   :  { %1941 = vmatpush1.bf16.msra.mxu1 %v4833_v33  ;;  %1901 = vmatprep.subr.bf16.mxu0 %v4838_v34 }
  0xf0   :  { %1942 = vmatprep.subr.bf16.mxu1 %v4841_v47  ;;  %v4920_v47 = vld [vmem:[#allocation5 + $0xa0] ss:$16 sps:$4 sm:$0xff]  }
  0xf2   :  { %1902 = vmatpush1.bf16.msra.mxu0 %v4836_v6 }
  0xf3   :  { %1943 = vmatpush1.bf16.msra.mxu1 %v4839_v7  ;;  %1903 = vmatprep.subr.bf16.mxu0 %v4844_v51  ;;  %v4925_v51 = vld [vmem:[#allocation5 + $0x84] ss:$16 sps:$4 sm:$0xff]  }
  0xf4   :  { %1944 = vmatprep.subr.bf16.mxu1 %v4847_v35  ;;  %v4923_v35 = vld [vmem:[#allocation5 + $0x80] ss:$16 sps:$4 sm:$0xff]  }
  0xf6   :  { %1904 = vmatpush1.bf16.msra.mxu0 %v4842_v38  ;;  %v4931_v38 = vld [vmem:[#allocation5 + $0x44] ss:$16 sps:$4 sm:$0xff]  }
  0xf7   :  { %1945 = vmatpush1.bf16.msra.mxu1 %v4845_v39  ;;  %1905 = vmatprep.subr.bf16.mxu0 %v4850_v40  ;;  %v5010_v39 = vld [vmem:[#allocation5 + $0x2e0] ss:$16 sps:$4 sm:$0xff]   ;;  %v5012_v40 = vld [vmem:[#allocation5 + $0x2e4] ss:$16 sps:$4 sm:$0xff]  }
  0xf8   :  { %1946 = vmatprep.subr.bf16.mxu1 %v4853_v36  ;;  %v5013_v36 = vld [vmem:[#allocation5 + $0x2c0] ss:$16 sps:$4 sm:$0xff]  }
  0xfa   :  { %1906 = vmatpush1.bf16.msra.mxu0 %v4848_v37  ;;  %v5015_v37 = vld [vmem:[#allocation5 + $0x2c4] ss:$16 sps:$4 sm:$0xff]  }
  0xfb   :  { %1947 = vmatpush1.bf16.msra.mxu1 %v4851_v41  ;;  %1907 = vmatprep.subr.bf16.mxu0 %v4856_v42  ;;  %v5018_v41 = vld [vmem:[#allocation5 + $0x2a4] ss:$16 sps:$4 sm:$0xff]   ;;  %v4929_v42 = vld [vmem:[#allocation5 + $0x40] ss:$16 sps:$4 sm:$0xff]  }
  0xfc   :  { %1948 = vmatprep.subr.bf16.mxu1 %v4859_v43  ;;  %v4934_v43 = vld [vmem:[#allocation5 + $0x24] ss:$16 sps:$4 sm:$0xff]  }
  0xfe   :  { %1908 = vmatpush1.bf16.msra.mxu0 %v4854_v44  ;;  %v5016_v44 = vld [vmem:[#allocation5 + $0x2a0] ss:$16 sps:$4 sm:$0xff]  }
  0xff   :  { %1949 = vmatpush1.bf16.msra.mxu1 %v4857_v45  ;;  %1909 = vmatprep.subr.bf16.mxu0 %v4862_v46  ;;  %v5021_v45 = vld [vmem:[#allocation5 + $0x284] ss:$16 sps:$4 sm:$0xff]   ;;  %v4932_v46 = vld [vmem:[#allocation5 + $0x20] ss:$16 sps:$4 sm:$0xff]  }
 0x100   :  { %1950 = vmatprep.subr.bf16.mxu1 %v4865_v48  ;;  %v4937_v48 = vld [vmem:[#allocation5 + $0x4] ss:$16 sps:$4 sm:$0xff]  }
 0x102   :  { %1910 = vmatpush1.bf16.msra.mxu0 %v4860_v49  ;;  %v5019_v49 = vld [vmem:[#allocation5 + $0x280] ss:$16 sps:$4 sm:$0xff]  }
 0x103   :  { %1951 = vmatpush1.bf16.msra.mxu1 %v4863_v50  ;;  %1911 = vmatprep.subr.bf16.mxu0 %v4868_v52  ;;  %v5024_v50 = vld [vmem:[#allocation5 + $0x264] ss:$16 sps:$4 sm:$0xff]   ;;  %v4935_v52 = vld [vmem:[#allocation5] ss:$16 sps:$4 sm:$0xff]  }
 0x104   :  { %1952 = vmatprep.subr.bf16.mxu1 %v4871_v53  ;;  %v4940_v53 = vld [vmem:[#allocation5 + $0x1e4] ss:$16 sps:$4 sm:$0xff]  }
 0x106   :  { %1912 = vmatpush2.bf16.msra.mxu0 %v4866_v54  ;;  %v5022_v54 = vld [vmem:[#allocation5 + $0x260] ss:$16 sps:$4 sm:$0xff]  }
 0x107   :  { %1953 = vmatpush2.bf16.msra.mxu1 %v4869_v55  ;;  %1913 = vmatprep.subr.bf16.mxu0 %v4874_v56  ;;  %v5027_v55 = vld [vmem:[#allocation5 + $0x244] ss:$16 sps:$4 sm:$0xff]   ;;  %v4938_v56 = vld [vmem:[#allocation5 + $0x1e0] ss:$16 sps:$4 sm:$0xff]  }
 0x108   :  { %1954 = vmatprep.subr.bf16.mxu1 %v4877_v57  ;;  %v4943_v57 = vld [vmem:[#allocation5 + $0x1c4] ss:$16 sps:$4 sm:$0xff]  }
 0x10a   :  { %1914 = vmatpush2.bf16.msra.mxu0 %v4872_v58  ;;  %v5025_v58 = vld [vmem:[#allocation5 + $0x240] ss:$16 sps:$4 sm:$0xff]  }
 0x10b   :  { %1955 = vmatpush2.bf16.msra.mxu1 %v4875_v59  ;;  %1915 = vmatprep.subr.bf16.mxu0 %v4880_v60  ;;  %v5030_v59 = vld [vmem:[#allocation5 + $0x224] ss:$16 sps:$4 sm:$0xff]   ;;  %v4941_v60 = vld [vmem:[#allocation5 + $0x1c0] ss:$16 sps:$4 sm:$0xff]  }
 0x10c   :  { %1956 = vmatprep.subr.bf16.mxu1 %v4883_v61  ;;  %v4946_v61 = vld [vmem:[#allocation5 + $0x1a4] ss:$16 sps:$4 sm:$0xff]  }
 0x10e   :  { %1916 = vmatpush2.bf16.msra.mxu0 %v4878_v62  ;;  %v5028_v62 = vld [vmem:[#allocation5 + $0x220] ss:$16 sps:$4 sm:$0xff]  }
 0x10f   :  { %1957 = vmatpush2.bf16.msra.mxu1 %v4881_v63  ;;  %1917 = vmatprep.subr.bf16.mxu0 %v4886_v0  ;;  %v5033_v63 = vld [vmem:[#allocation5 + $0x204] ss:$16 sps:$4 sm:$0xff]   ;;  %v4944_v0 = vld [vmem:[#allocation5 + $0x1a0] ss:$16 sps:$4 sm:$0xff]  }
 0x110   :  { %1958 = vmatprep.subr.bf16.mxu1 %v4889_v1  ;;  %v4949_v1 = vld [vmem:[#allocation5 + $0x184] ss:$16 sps:$4 sm:$0xff]  }
 0x112   :  { %1918 = vmatpush2.bf16.msra.mxu0 %v4884_v2  ;;  %v5031_v2 = vld [vmem:[#allocation5 + $0x200] ss:$16 sps:$4 sm:$0xff]  }
 0x113   :  { %1959 = vmatpush2.bf16.msra.mxu1 %v4887_v3  ;;  %1919 = vmatprep.subr.bf16.mxu0 %v4892_v4  ;;  %v5036_v3 = vld [vmem:[#allocation5 + $0x3e4] ss:$16 sps:$4 sm:$0xff]   ;;  %v4947_v4 = vld [vmem:[#allocation5 + $0x180] ss:$16 sps:$4 sm:$0xff]  }
 0x114   :  { %1960 = vmatprep.subr.bf16.mxu1 %v4895_v5  ;;  %v4952_v5 = vld [vmem:[#allocation5 + $0x164] ss:$16 sps:$4 sm:$0xff]  }
 0x116   :  { %1920 = vmatpush2.bf16.msra.mxu0 %v4890_v8  ;;  %v5034_v8 = vld [vmem:[#allocation5 + $0x3e0] ss:$16 sps:$4 sm:$0xff]  }
 0x117   :  { %1961 = vmatpush2.bf16.msra.mxu1 %v4893_v9  ;;  %1921 = vmatprep.subr.bf16.mxu0 %v4898_v10  ;;  %v5039_v9 = vld [vmem:[#allocation5 + $0x3c4] ss:$16 sps:$4 sm:$0xff]   ;;  %v4950_v10 = vld [vmem:[#allocation5 + $0x160] ss:$16 sps:$4 sm:$0xff]  }
 0x118   :  { %1962 = vmatprep.subr.bf16.mxu1 %v4901_v11  ;;  %v4955_v11 = vld [vmem:[#allocation5 + $0x144] ss:$16 sps:$4 sm:$0xff]  }
 0x11a   :  { %1922 = vmatpush2.bf16.msra.mxu0 %v4896_v12  ;;  %v5037_v12 = vld [vmem:[#allocation5 + $0x3c0] ss:$16 sps:$4 sm:$0xff]  }
 0x11b   :  { %1963 = vmatpush2.bf16.msra.mxu1 %v4899_v13  ;;  %1923 = vmatprep.subr.bf16.mxu0 %v4904_v14  ;;  %v5042_v13 = vld [vmem:[#allocation5 + $0x3a4] ss:$16 sps:$4 sm:$0xff]   ;;  %v4953_v14 = vld [vmem:[#allocation5 + $0x140] ss:$16 sps:$4 sm:$0xff]  }
 0x11c   :  { %1964 = vmatprep.subr.bf16.mxu1 %v4907_v15  ;;  %v4958_v15 = vld [vmem:[#allocation5 + $0x124] ss:$16 sps:$4 sm:$0xff]  }
 0x11e   :  { %1924 = vmatpush2.bf16.msra.mxu0 %v4902_v18  ;;  %v5040_v18 = vld [vmem:[#allocation5 + $0x3a0] ss:$16 sps:$4 sm:$0xff]  }
 0x11f   :  { %1965 = vmatpush2.bf16.msra.mxu1 %v4905_v19  ;;  %1925 = vmatprep.subr.bf16.mxu0 %v4910_v20  ;;  %v5045_v19 = vld [vmem:[#allocation5 + $0x384] ss:$16 sps:$4 sm:$0xff]   ;;  %v1979_v20 = vlaneseq }
 0x120   :  { %1966 = vmatprep.subr.bf16.mxu1 %v4913_v21  ;;  %v4956_v21 = vld [vmem:[#allocation5 + $0x120] ss:$16 sps:$4 sm:$0xff]  }
 0x122   :  { %1926 = vmatpush2.bf16.msra.mxu0 %v4908_v22  ;;  %v4961_v22 = vld [vmem:[#allocation5 + $0x104] ss:$16 sps:$4 sm:$0xff]  }
 0x123   :  { %1967 = vmatpush2.bf16.msra.mxu1 %v4911_v23  ;;  %2809 = vmatprep.subr.bf16.mxu0 %v4916_v24  ;;  %v5043_v23 = vld [vmem:[#allocation5 + $0x380] ss:$16 sps:$4 sm:$0xff]  }
 0x124   :  { %2850 = vmatprep.subr.bf16.mxu1 %v5012_v40  ;;  %v337_v24 = vld [vmem:[%s5600_s1] sm:$0xff] }
 0x125   :  { %v5485_v27 = vpop.f32.mrf.mxu0  ;;  %1928 = vmatmul.mubr.bf16.vlgmr.msra.gmra.mxu0 %v5471_v16  ;;  %v4928_v16 = vld [vmem:[#allocation5 + $0x64] ss:$16 sps:$4 sm:$0xff]  }
 0x126   :  { %v5487_v28 = vpop.f32.mrf.mxu1  ;;  %1969 = vmatmul.mubr.bf16.vlgmr.msra.gmra.mxu1 %v5475_v17  ;;  %2810 = vmatpush1.bf16.msra.mxu0 %v4914_v25  ;;  %v4926_v17 = vld [vmem:[#allocation5 + $0x60] ss:$16 sps:$4 sm:$0xff]   ;;  %v5048_v25 = vld [vmem:[#allocation5 + $0x364] ss:$16 sps:$4 sm:$0xff]  }
 0x127   :  { %v5491_v30 = vpop.f32.mrf.mxu0  ;;  %2811 = vmatprep.subr.bf16.mxu0 %v4919_v26  ;;  %2851 = vmatpush1.bf16.msra.mxu1 %v5010_v39  ;;  %v5498_v26 = vshrl.u32 %v1979_v20, 7  ;;  %v5051_v40 = vld [vmem:[#allocation5 + $0x344] ss:$16 sps:$4 sm:$0xff]   ;;  %v4991_v20 = vld [vmem:[#allocation5 + $0x1cc] ss:$16 sps:$4 sm:$0xff]  }
 0x128   :  { %v5493_v31 = vpop.f32.mrf.mxu1  ;;  %2852 = vmatprep.subr.bf16.mxu1 %v5015_v37 }
 0x129   :  { %v1687_v33 = vpop.f32.mrf.mxu0 }
 0x12a   :  { %v1728_v34 = vpop.f32.mrf.mxu1  ;;  %2812 = vmatpush1.bf16.msra.mxu0 %v4917_v29  ;;  %v4959_v29 = vld [vmem:[#allocation5 + $0x100] ss:$16 sps:$4 sm:$0xff]   ;;  %v4964_v33 = vld [vmem:[#allocation5 + $0xec] ss:$16 sps:$4 sm:$0xff]  }
 0x12b   :  { %v1688_v6 = vpop.f32.mrf.mxu0  ;;  %2813 = vmatprep.subr.bf16.mxu0 %v4922_v32  ;;  %2853 = vmatpush1.bf16.msra.mxu1 %v5013_v36  ;;  %v338_v32 = vld [vmem:[%s5600_s1 + $0x8] sm:$0xff]  ;;  %v1684_v34 = vadd.f32 %v5485_v27, %v337_v24 }
 0x12c   :  { %v1729_v7 = vpop.f32.mrf.mxu1  ;;  %2854 = vmatprep.subr.bf16.mxu1 %v5018_v41  ;;  %v1686_v6 = vadd.f32 %v5491_v30, %v338_v32  ;;  %v5049_v41 = vld [vmem:[#allocation5 + $0x340] ss:$16 sps:$4 sm:$0xff]   ;;  %v4997_v24 = vld [vmem:[#allocation5 + $0x18c] ss:$16 sps:$4 sm:$0xff]   ;;  %v4998_v32 = vld [vmem:[#allocation5 + $0x168] ss:$16 sps:$4 sm:$0xff]  }
 0x12d   :  { %v5506_v7 = vsub.s32 0, %v5498_v26 }
 0x12e   :  { %2814 = vmatpush1.bf16.msra.mxu0 %v4920_v47  ;;  %v5046_v47 = vld [vmem:[#allocation5 + $0x360] ss:$16 sps:$4 sm:$0xff]   ;;  %v1727_v30 = vadd.f32 %v5493_v31, %v1686_v6  ;;  %v5054_v31 = vld [vmem:[#allocation5 + $0x324] ss:$16 sps:$4 sm:$0xff]   ;;  %v5001_v6 = vld [vmem:[#allocation5 + $0x148] ss:$16 sps:$4 sm:$0xff]  }
 0x12f   :  { %2815 = vmatprep.subr.bf16.mxu0 %v4925_v51  ;;  %2855 = vmatpush1.bf16.msra.mxu1 %v5016_v44  ;;  %v5511_v51 = vld [vmem:[%s5602_s3] sm:$0xf] }
 0x130   :  { %2856 = vmatprep.subr.bf16.mxu1 %v5021_v45  ;;  %v1982_v39 = vrot.slane %v5511_v51, %v5506_v7 }
 0x132   :  { %2816 = vmatpush1.bf16.msra.mxu0 %v4923_v35  ;;  %v1725_v35 = vadd.f32 %v5487_v28, %v1684_v34 }
 0x133   :  { %2817 = vmatprep.subr.bf16.mxu0 %v4928_v16  ;;  %2857 = vmatpush1.bf16.msra.mxu1 %v5019_v49  ;;  %v5515_v16 = vsub.s32 1, %v5498_v26 }
 0x134   :  { %2858 = vmatprep.subr.bf16.mxu1 %v5024_v50 }
 0x135   :  { %v1986_v28 = vrot.slane %v5511_v51, %v5515_v16 }
 0x136   :  { %2818 = vmatpush1.bf16.msra.mxu0 %v4926_v17 }
 0x137   :  { %2819 = vmatprep.subr.bf16.mxu0 %v4931_v38  ;;  %2859 = vmatpush1.bf16.msra.mxu1 %v5022_v54 }
 0x138   :  { %2860 = vmatprep.subr.bf16.mxu1 %v5027_v55 }
 0x13a   :  { %2820 = vmatpush1.bf16.msra.mxu0 %v4929_v42 }
 0x13b   :  { %2821 = vmatprep.subr.bf16.mxu0 %v4934_v43  ;;  %2861 = vmatpush1.bf16.msra.mxu1 %v5025_v58  ;;  %v5055_v58 = vld [vmem:[#allocation5 + $0x300] ss:$16 sps:$4 sm:$0xff]  }
 0x13c   :  { %2862 = vmatprep.subr.bf16.mxu1 %v5030_v59 }
 0x13e   :  { %2822 = vmatpush1.bf16.msra.mxu0 %v4932_v46 }
 0x13f   :  { %2823 = vmatprep.subr.bf16.mxu0 %v4937_v48  ;;  %2863 = vmatpush1.bf16.msra.mxu1 %v5028_v62 }
 0x140   :  { %2864 = vmatprep.subr.bf16.mxu1 %v5033_v63  ;;  %v4967_v63 = vld [vmem:[#allocation5 + $0xcc] ss:$16 sps:$4 sm:$0xff]  }
 0x142   :  { %2824 = vmatpush1.bf16.msra.mxu0 %v4935_v52  ;;  %v5052_v52 = vld [vmem:[#allocation5 + $0x320] ss:$16 sps:$4 sm:$0xff]  }
 0x143   :  { %2825 = vmatprep.subr.bf16.mxu0 %v4940_v53  ;;  %2865 = vmatpush1.bf16.msra.mxu1 %v5031_v2  ;;  %v4970_v2 = vld [vmem:[#allocation5 + $0xac] ss:$16 sps:$4 sm:$0xff]  }
 0x144   :  { %2866 = vmatprep.subr.bf16.mxu1 %v5036_v3  ;;  %v4968_v3 = vld [vmem:[#allocation5 + $0xa8] ss:$16 sps:$4 sm:$0xff]  }
 0x146   :  { %2826 = vmatpush2.bf16.msra.mxu0 %v4938_v56  ;;  %v5057_v56 = vld [vmem:[#allocation5 + $0x304] ss:$16 sps:$4 sm:$0xff]  }
 0x147   :  { %2827 = vmatprep.subr.bf16.mxu0 %v4943_v57  ;;  %2867 = vmatpush2.bf16.msra.mxu1 %v5034_v8  ;;  %v4976_v8 = vld [vmem:[#allocation5 + $0x6c] ss:$16 sps:$4 sm:$0xff]  }
 0x148   :  { %2868 = vmatprep.subr.bf16.mxu1 %v5039_v9  ;;  %v4974_v9 = vld [vmem:[#allocation5 + $0x68] ss:$16 sps:$4 sm:$0xff]  }
 0x14a   :  { %2828 = vmatpush2.bf16.msra.mxu0 %v4941_v60 }
 0x14b   :  { %2829 = vmatprep.subr.bf16.mxu0 %v4946_v61  ;;  %2869 = vmatpush2.bf16.msra.mxu1 %v5037_v12  ;;  %v4962_v61 = vld [vmem:[#allocation5 + $0xe8] ss:$16 sps:$4 sm:$0xff]   ;;  %v4982_v12 = vld [vmem:[#allocation5 + $0x2c] ss:$16 sps:$4 sm:$0xff]  }
 0x14c   :  { %2870 = vmatprep.subr.bf16.mxu1 %v5042_v13  ;;  %v4980_v13 = vld [vmem:[#allocation5 + $0x28] ss:$16 sps:$4 sm:$0xff]  }
 0x14e   :  { %2830 = vmatpush2.bf16.msra.mxu0 %v4944_v0  ;;  %v5060_v0 = vld [vmem:[#allocation5 + $0x2ec] ss:$16 sps:$4 sm:$0xff]  }
 0x14f   :  { %2831 = vmatprep.subr.bf16.mxu0 %v4949_v1  ;;  %2871 = vmatpush2.bf16.msra.mxu1 %v5040_v18  ;;  %v4965_v1 = vld [vmem:[#allocation5 + $0xc8] ss:$16 sps:$4 sm:$0xff]   ;;  %v4988_v18 = vld [vmem:[#allocation5 + $0x1ec] ss:$16 sps:$4 sm:$0xff]  }
 0x150   :  { %2872 = vmatprep.subr.bf16.mxu1 %v5045_v19  ;;  %v4986_v19 = vld [vmem:[#allocation5 + $0x1e8] ss:$16 sps:$4 sm:$0xff]  }
 0x152   :  { %2832 = vmatpush2.bf16.msra.mxu0 %v4947_v4  ;;  %v4973_v4 = vld [vmem:[#allocation5 + $0x8c] ss:$16 sps:$4 sm:$0xff]  }
 0x153   :  { %2833 = vmatprep.subr.bf16.mxu0 %v4952_v5  ;;  %2873 = vmatpush2.bf16.msra.mxu1 %v5043_v23  ;;  %v4971_v5 = vld [vmem:[#allocation5 + $0x88] ss:$16 sps:$4 sm:$0xff]  }
 0x154   :  { %2874 = vmatprep.subr.bf16.mxu1 %v5048_v25  ;;  %v4992_v23 = vld [vmem:[#allocation5 + $0x1a8] ss:$16 sps:$4 sm:$0xff]  }
 0x155   :  { %v4995_v25 = vld [vmem:[#allocation5 + $0x188] ss:$16 sps:$4 sm:$0xff]  }
 0x156   :  { %2834 = vmatpush2.bf16.msra.mxu0 %v4950_v10  ;;  %v4979_v10 = vld [vmem:[#allocation5 + $0x4c] ss:$16 sps:$4 sm:$0xff]  }
 0x157   :  { %2835 = vmatprep.subr.bf16.mxu0 %v4955_v11  ;;  %2875 = vmatpush2.bf16.msra.mxu1 %v5046_v47  ;;  %v4977_v11 = vld [vmem:[#allocation5 + $0x48] ss:$16 sps:$4 sm:$0xff]  }
 0x158   :  { %2876 = vmatprep.subr.bf16.mxu1 %v5051_v40  ;;  %v5009_v40 = vld [vmem:[#allocation5 + $0x10c] ss:$16 sps:$4 sm:$0xff]  }
 0x15a   :  { %2836 = vmatpush2.bf16.msra.mxu0 %v4953_v14  ;;  %v4985_v14 = vld [vmem:[#allocation5 + $0xc] ss:$16 sps:$4 sm:$0xff]  }
 0x15b   :  { %2837 = vmatprep.subr.bf16.mxu0 %v4958_v15  ;;  %2877 = vmatpush2.bf16.msra.mxu1 %v5049_v41  ;;  %v4983_v15 = vld [vmem:[#allocation5 + $0x8] ss:$16 sps:$4 sm:$0xff]  }
 0x15c   :  { %2878 = vmatprep.subr.bf16.mxu1 %v5054_v31  ;;  %v5007_v41 = vld [vmem:[#allocation5 + $0x108] ss:$16 sps:$4 sm:$0xff]  }
 0x15e   :  { %2838 = vmatpush2.bf16.msra.mxu0 %v4956_v21  ;;  %v4989_v21 = vld [vmem:[#allocation5 + $0x1c8] ss:$16 sps:$4 sm:$0xff]  }
 0x15f   :  { %2839 = vmatprep.subr.bf16.mxu0 %v4961_v22  ;;  %2879 = vmatpush2.bf16.msra.mxu1 %v5052_v52  ;;  %v4994_v22 = vld [vmem:[#allocation5 + $0x1ac] ss:$16 sps:$4 sm:$0xff]  }
 0x160   :  { %2880 = vmatprep.subr.bf16.mxu1 %v5057_v56 }
 0x162   :  { %2840 = vmatpush2.bf16.msra.mxu0 %v4959_v29  ;;  %v5000_v29 = vld [vmem:[#allocation5 + $0x16c] ss:$16 sps:$4 sm:$0xff]  }
 0x163   :  { %2891 = vmatprep.subr.bf16.mxu0 %v4964_v33  ;;  %2881 = vmatpush2.bf16.msra.mxu1 %v5055_v58  ;;  %v5003_v33 = vld [vmem:[#allocation5 + $0x14c] ss:$16 sps:$4 sm:$0xff]  }
 0x164   :  { %2932 = vmatprep.subr.bf16.mxu1 %v5060_v0 }
 0x165   :  { %v1765_v27 = vpop.f32.mrf.mxu0 }
 0x166   :  { %v1806_v17 = vpop.f32.mrf.mxu1  ;;  %v1766_v38 = vadd.f32 %v1765_v27, %v1725_v35  ;;  %v5006_v35 = vld [vmem:[#allocation5 + $0x12c] ss:$16 sps:$4 sm:$0xff]  }
 0x167   :  { %v1767_v36 = vpop.f32.mrf.mxu0 }
 0x168   :  { %v1808_v37 = vpop.f32.mrf.mxu1  ;;  %v1807_v42 = vadd.f32 %v1806_v17, %v1766_v38  ;;  %v1768_v43 = vadd.f32 %v1767_v36, %v1727_v30 }
 0x169   :  { %v1769_v44 = vpop.f32.mrf.mxu0 }
 0x16a   :  { %v1810_v45 = vpop.f32.mrf.mxu1  ;;  %v1999_v46 = vadd.f32 %v1982_v39, %v1807_v42  ;;  %v1809_v48 = vadd.f32 %v1808_v37, %v1768_v43  ;;  %v5004_v39 = vld [vmem:[#allocation5 + $0x128] ss:$16 sps:$4 sm:$0xff]   ;;  %v339_v42 = vld [vmem:[%s5600_s1 + $0x10] sm:$0xff] }
 0x16b   :  { %v1770_v49 = vpop.f32.mrf.mxu0  ;;  %v340_v43 = vld [vmem:[%s5600_s1 + $0x18] sm:$0xff]  ;;  %v5533_v45 = vsub.s32 2, %v5498_v26 }
 0x16c   :  { %v1811_v50 = vpop.f32.mrf.mxu1  ;;  %vm2003_vm0 = vcmp.gt.f32.partialorder %v1999_v46, 0.0  ;;  %v2007_v53 = vmul.f32 0.2, %v1999_v46  ;;  %v2000_v54 = vadd.f32 %v1986_v28, %v1809_v48  ;;  %v5536_v48 = vsub.s32 3, %v5498_v26 }
 0x16e   :  { %v2008_v55 = vmul.f32 0.2, %v2000_v54  ;;  %vm2004_vm1 = vcmp.gt.f32.partialorder %v2000_v54, 0.0  ;;  %v2011_v57 = vsel %vm2003_vm0, %v1999_v46, %v2007_v53  ;;  %v1990_v53 = vrot.slane %v5511_v51, %v5533_v45 }
 0x16f   :  { %v5522_v62 = vpack.c.bf16 %v2011_v57, %v2011_v57  ;;  %v1994_v58 = vrot.slane %v5511_v51, %v5536_v48  ;;  %v5061_v51 = vld [vmem:[#allocation5 + $0x2c8] ss:$16 sps:$4 sm:$0xff]  }
 0x170   :  { %v2012_v59 = vsel %vm2004_vm1, %v2000_v54, %v2008_v55 }
 0x171   :  { %v2016_v60 = vpack.c.bf16 %v2012_v59, %v2012_v59 }
 0x173   :  { %2841 = vmatprep.mubr.bf16.mxu0 %v2016_v60 }
 0x174   :  { %2842 = vmatmul.mubr.bf16.vlgmr.msra.gmra.mxu0 %v5522_v62 }
 0x175   :  { %2892 = vmatpush1.bf16.msra.mxu0 %v4962_v61  ;;  %2923 = vmatprep.mubr.bf16.mxu0 %v2016_v60 }
 0x176   :  { %2893 = vmatprep.subr.bf16.mxu0 %v4967_v63 }
 0x179   :  { %2894 = vmatpush1.bf16.msra.mxu0 %v4965_v1 }
 0x17a   :  { %2895 = vmatprep.subr.bf16.mxu0 %v4970_v2 }
 0x17d   :  { %2896 = vmatpush1.bf16.msra.mxu0 %v4968_v3 }
 0x17e   :  { %2897 = vmatprep.subr.bf16.mxu0 %v4973_v4 }
 0x181   :  { %2898 = vmatpush1.bf16.msra.mxu0 %v4971_v5 }
 0x182   :  { %2899 = vmatprep.subr.bf16.mxu0 %v4976_v8  ;;  %v5058_v8 = vld [vmem:[#allocation5 + $0x2e8] ss:$16 sps:$4 sm:$0xff]  }
 0x185   :  { %2900 = vmatpush1.bf16.msra.mxu0 %v4974_v9 }
 0x186   :  { %2901 = vmatprep.subr.bf16.mxu0 %v4979_v10  ;;  %v5063_v10 = vld [vmem:[#allocation5 + $0x2cc] ss:$16 sps:$4 sm:$0xff]  }
 0x189   :  { %2902 = vmatpush1.bf16.msra.mxu0 %v4977_v11  ;;  %v5066_v11 = vld [vmem:[#allocation5 + $0x2ac] ss:$16 sps:$4 sm:$0xff]  }
 0x18a   :  { %2903 = vmatprep.subr.bf16.mxu0 %v4982_v12  ;;  %v5064_v12 = vld [vmem:[#allocation5 + $0x2a8] ss:$16 sps:$4 sm:$0xff]  }
 0x18d   :  { %2904 = vmatpush1.bf16.msra.mxu0 %v4980_v13  ;;  %v5069_v13 = vld [vmem:[#allocation5 + $0x28c] ss:$16 sps:$4 sm:$0xff]  }
 0x18e   :  { %2905 = vmatprep.subr.bf16.mxu0 %v4985_v14  ;;  %v5106_v14 = vld [vmem:[#allocation7 + $0xe0] ss:$16 sps:$4 sm:$0xff]  }
 0x191   :  { %2906 = vmatpush1.bf16.msra.mxu0 %v4983_v15  ;;  %v5108_v15 = vld [vmem:[#allocation7 + $0xe4] ss:$16 sps:$4 sm:$0xff]  }
 0x192   :  { %2907 = vmatprep.subr.bf16.mxu0 %v4988_v18  ;;  %v5111_v18 = vld [vmem:[#allocation7 + $0xc4] ss:$16 sps:$4 sm:$0xff]  }
 0x195   :  { %2908 = vmatpush2.bf16.msra.mxu0 %v4986_v19  ;;  %v5067_v19 = vld [vmem:[#allocation5 + $0x288] ss:$16 sps:$4 sm:$0xff]  }
 0x196   :  { %2909 = vmatprep.subr.bf16.mxu0 %v4991_v20  ;;  %v5109_v20 = vld [vmem:[#allocation7 + $0xc0] ss:$16 sps:$4 sm:$0xff]  }
 0x199   :  { %2910 = vmatpush2.bf16.msra.mxu0 %v4989_v21  ;;  %v5072_v21 = vld [vmem:[#allocation5 + $0x26c] ss:$16 sps:$4 sm:$0xff]  }
 0x19a   :  { %2911 = vmatprep.subr.bf16.mxu0 %v4994_v22  ;;  %v5114_v22 = vld [vmem:[#allocation7 + $0xa4] ss:$16 sps:$4 sm:$0xff]  }
 0x19d   :  { %2912 = vmatpush2.bf16.msra.mxu0 %v4992_v23  ;;  %v5070_v23 = vld [vmem:[#allocation5 + $0x268] ss:$16 sps:$4 sm:$0xff]  }
 0x19e   :  { %2913 = vmatprep.subr.bf16.mxu0 %v4997_v24  ;;  %v5112_v24 = vld [vmem:[#allocation7 + $0xa0] ss:$16 sps:$4 sm:$0xff]  }
 0x1a1   :  { %2914 = vmatpush2.bf16.msra.mxu0 %v4995_v25  ;;  %v5075_v25 = vld [vmem:[#allocation5 + $0x24c] ss:$16 sps:$4 sm:$0xff]  }
 0x1a2   :  { %2915 = vmatprep.subr.bf16.mxu0 %v5000_v29  ;;  %v5117_v29 = vld [vmem:[#allocation7 + $0x84] ss:$16 sps:$4 sm:$0xff]  }
 0x1a5   :  { %2916 = vmatpush2.bf16.msra.mxu0 %v4998_v32  ;;  %v1847_v34 = vpop.f32.mrf.mxu0  ;;  %v5073_v32 = vld [vmem:[#allocation5 + $0x248] ss:$16 sps:$4 sm:$0xff]  }
 0x1a6   :  { %v1888_v47 = vpop.f32.mrf.mxu1  ;;  %2917 = vmatprep.subr.bf16.mxu0 %v5003_v33  ;;  %v1848_v28 = vadd.f32 %v1847_v34, %v339_v42  ;;  %v5115_v33 = vld [vmem:[#allocation7 + $0x80] ss:$16 sps:$4 sm:$0xff]   ;;  %v5078_v34 = vld [vmem:[#allocation5 + $0x22c] ss:$16 sps:$4 sm:$0xff]   ;;  %v5129_v42 = vld [vmem:[#allocation7 + $0x4] ss:$16 sps:$4 sm:$0xff]  }
 0x1a7   :  { %v1849_v27 = vpop.f32.mrf.mxu0 }
 0x1a8   :  { %v1890_v17 = vpop.f32.mrf.mxu1  ;;  %v1850_v44 = vadd.f32 %v1849_v27, %v340_v43  ;;  %v1889_v46 = vadd.f32 %v1888_v47, %v1848_v28  ;;  %v5120_v47 = vld [vmem:[#allocation7 + $0x64] ss:$16 sps:$4 sm:$0xff]   ;;  %v5081_v27 = vld [vmem:[#allocation5 + $0x20c] ss:$16 sps:$4 sm:$0xff]   ;;  %v5085_v43 = vld [vmem:[#allocation5 + $0x3c8] ss:$16 sps:$4 sm:$0xff]  }
 0x1a9   :  { %2918 = vmatpush2.bf16.msra.mxu0 %v5001_v6  ;;  %v1851_v30 = vpop.f32.mrf.mxu0  ;;  %v5076_v6 = vld [vmem:[#allocation5 + $0x228] ss:$16 sps:$4 sm:$0xff]   ;;  %v5127_v28 = vld [vmem:[#allocation7] ss:$16 sps:$4 sm:$0xff]  }
 0x1aa   :  { %v1892_v38 = vpop.f32.mrf.mxu1  ;;  %2919 = vmatprep.subr.bf16.mxu0 %v5006_v35  ;;  %v1891_v50 = vadd.f32 %v1890_v17, %v1850_v44  ;;  %v5118_v35 = vld [vmem:[#allocation7 + $0x60] ss:$16 sps:$4 sm:$0xff]   ;;  %v5123_v17 = vld [vmem:[#allocation7 + $0x44] ss:$16 sps:$4 sm:$0xff]   ;;  %v5079_v30 = vld [vmem:[#allocation5 + $0x208] ss:$16 sps:$4 sm:$0xff]  }
 0x1ab   :  { %v1852_v36 = vpop.f32.mrf.mxu0  ;;  %v5121_v38 = vld [vmem:[#allocation7 + $0x40] ss:$16 sps:$4 sm:$0xff]   ;;  %v5090_v44 = vld [vmem:[#allocation5 + $0x3ac] ss:$16 sps:$4 sm:$0xff]  }
 0x1ac   :  { %v1893_v37 = vpop.f32.mrf.mxu1  ;;  %v5082_v36 = vld [vmem:[#allocation5 + $0x3e8] ss:$16 sps:$4 sm:$0xff]  }
 0x1ad   :  { %2920 = vmatpush2.bf16.msra.mxu0 %v5004_v39  ;;  %v5084_v39 = vld [vmem:[#allocation5 + $0x3ec] ss:$16 sps:$4 sm:$0xff]   ;;  %v5124_v37 = vld [vmem:[#allocation7 + $0x20] ss:$16 sps:$4 sm:$0xff]  }
 0x1ae   :  { %2921 = vmatprep.subr.bf16.mxu0 %v5009_v40  ;;  %v5126_v40 = vld [vmem:[#allocation7 + $0x24] ss:$16 sps:$4 sm:$0xff]  }
 0x1b1   :  { %2922 = vmatpush2.bf16.msra.mxu0 %v5007_v41  ;;  %v5087_v41 = vld [vmem:[#allocation5 + $0x3cc] ss:$16 sps:$4 sm:$0xff]  }
 0x1b2   :  { %3779 = vmatprep.subr.bf16.mxu0 %v5108_v15  ;;  %v5151_v15 = vld [vmem:[#allocation7 + $0x100] ss:$16 sps:$4 sm:$0xff]  }
 0x1b4   :  { %2924 = vmatmul.mubr.bf16.vlgmr.msra.gmra.mxu0 %v5522_v62 }
 0x1b5   :  { %3780 = vmatpush1.bf16.msra.mxu0 %v5106_v14 }
 0x1b6   :  { %3781 = vmatprep.subr.bf16.mxu0 %v5111_v18  ;;  %v5154_v18 = vld [vmem:[#allocation7 + $0x2e0] ss:$16 sps:$4 sm:$0xff]  }
 0x1b9   :  { %3782 = vmatpush1.bf16.msra.mxu0 %v5109_v20  ;;  %v5159_v20 = vld [vmem:[#allocation7 + $0xec] ss:$16 sps:$4 sm:$0xff]  }
 0x1ba   :  { %3783 = vmatprep.subr.bf16.mxu0 %v5114_v22  ;;  %v5166_v22 = vld [vmem:[#allocation7 + $0x2a0] ss:$16 sps:$4 sm:$0xff]  }
 0x1bd   :  { %3784 = vmatpush1.bf16.msra.mxu0 %v5112_v24  ;;  %v5172_v24 = vld [vmem:[#allocation7 + $0x280] ss:$16 sps:$4 sm:$0xff]  }
 0x1be   :  { %3785 = vmatprep.subr.bf16.mxu0 %v5117_v29  ;;  %v5178_v29 = vld [vmem:[#allocation7 + $0x260] ss:$16 sps:$4 sm:$0xff]  }
 0x1c1   :  { %3786 = vmatpush1.bf16.msra.mxu0 %v5115_v33  ;;  %v5184_v33 = vld [vmem:[#allocation7 + $0x240] ss:$16 sps:$4 sm:$0xff]  }
 0x1c2   :  { %3787 = vmatprep.subr.bf16.mxu0 %v5120_v47  ;;  %v5190_v47 = vld [vmem:[#allocation7 + $0x220] ss:$16 sps:$4 sm:$0xff]  }
 0x1c5   :  { %3788 = vmatpush1.bf16.msra.mxu0 %v5118_v35  ;;  %v5196_v35 = vld [vmem:[#allocation7 + $0x200] ss:$16 sps:$4 sm:$0xff]  }
 0x1c6   :  { %3789 = vmatprep.subr.bf16.mxu0 %v5123_v17  ;;  %v5202_v17 = vld [vmem:[#allocation7 + $0x3e0] ss:$16 sps:$4 sm:$0xff]  }
 0x1c9   :  { %3790 = vmatpush1.bf16.msra.mxu0 %v5121_v38  ;;  %v5208_v38 = vld [vmem:[#allocation7 + $0x3c0] ss:$16 sps:$4 sm:$0xff]  }
 0x1ca   :  { %3791 = vmatprep.subr.bf16.mxu0 %v5126_v40  ;;  %v5214_v40 = vld [vmem:[#allocation7 + $0x3a0] ss:$16 sps:$4 sm:$0xff]  }
 0x1cd   :  { %3792 = vmatpush1.bf16.msra.mxu0 %v5124_v37  ;;  %v5220_v37 = vld [vmem:[#allocation7 + $0x380] ss:$16 sps:$4 sm:$0xff]  }
 0x1ce   :  { %3793 = vmatprep.subr.bf16.mxu0 %v5129_v42  ;;  %v5226_v42 = vld [vmem:[#allocation7 + $0x360] ss:$16 sps:$4 sm:$0xff]  }
 0x1d1   :  { %3794 = vmatpush1.bf16.msra.mxu0 %v5127_v28  ;;  %v5232_v28 = vld [vmem:[#allocation7 + $0x340] ss:$16 sps:$4 sm:$0xff]  }
 0x1e5   :  { %v1929_v31 = vpop.f32.mrf.mxu0 }
 0x1e6   :  { %v1970_v49 = vpop.f32.mrf.mxu1  ;;  %v1930_v52 = vadd.f32 %v1929_v31, %v1889_v46  ;;  %v5132_v46 = vld [vmem:[#allocation7 + $0x1e4] ss:$16 sps:$4 sm:$0xff]   ;;  %v5088_v31 = vld [vmem:[#allocation5 + $0x3a8] ss:$16 sps:$4 sm:$0xff]  }
 0x1e7   :  { %v1931_v54 = vpop.f32.mrf.mxu0  ;;  %3795 = vmatprep.subr.bf16.mxu0 %v5132_v46 }
 0x1e8   :  { %v1972_v55 = vpop.f32.mrf.mxu1  ;;  %v1971_v56 = vadd.f32 %v1970_v49, %v1930_v52  ;;  %v1932_v57 = vadd.f32 %v1931_v54, %v1891_v50  ;;  %v5130_v49 = vld [vmem:[#allocation7 + $0x1e0] ss:$16 sps:$4 sm:$0xff]   ;;  %v5093_v50 = vld [vmem:[#allocation5 + $0x38c] ss:$16 sps:$4 sm:$0xff]   ;;  %v5135_v52 = vld [vmem:[#allocation7 + $0x1c4] ss:$16 sps:$4 sm:$0xff]  }
 0x1e9   :  { %v1933_v59 = vpop.f32.mrf.mxu0  ;;  %3796 = vmatpush2.bf16.msra.mxu0 %v5130_v49  ;;  %v5133_v54 = vld [vmem:[#allocation7 + $0x1c0] ss:$16 sps:$4 sm:$0xff]  }
 0x1ea   :  { %v1974_v60 = vpop.f32.mrf.mxu1  ;;  %v2001_v61 = vadd.f32 %v1990_v53, %v1971_v56  ;;  %v1973_v62 = vadd.f32 %v1972_v55, %v1932_v57  ;;  %v5091_v53 = vld [vmem:[#allocation5 + $0x388] ss:$16 sps:$4 sm:$0xff]   ;;  %v5096_v55 = vld [vmem:[#allocation5 + $0x36c] ss:$16 sps:$4 sm:$0xff]   ;;  %3797 = vmatprep.subr.bf16.mxu0 %v5135_v52  ;;  %v5138_v56 = vld [vmem:[#allocation7 + $0x1a4] ss:$16 sps:$4 sm:$0xff]  }
 0x1eb   :  { %v1934_v26 = vpop.f32.mrf.mxu0  ;;  %v5094_v57 = vld [vmem:[#allocation5 + $0x368] ss:$16 sps:$4 sm:$0xff]   ;;  %v5099_v59 = vld [vmem:[#allocation5 + $0x34c] ss:$16 sps:$4 sm:$0xff]   ;;  %v5141_v60 = vld [vmem:[#allocation7 + $0x184] ss:$16 sps:$4 sm:$0xff]  }
 0x1ec   :  { %v1975_v63 = vpop.f32.mrf.mxu1  ;;  %vm2005_vm2 = vcmp.gt.f32.partialorder %v2001_v61, 0.0  ;;  %v2009_v0 = vmul.f32 0.2, %v2001_v61  ;;  %v2002_v1 = vadd.f32 %v1994_v58, %v1973_v62  ;;  %v5136_v58 = vld [vmem:[#allocation7 + $0x1a0] ss:$16 sps:$4 sm:$0xff]  }
 0x1ed   :  { %3798 = vmatpush2.bf16.msra.mxu0 %v5133_v54  ;;  %v5139_v62 = vld [vmem:[#allocation7 + $0x180] ss:$16 sps:$4 sm:$0xff]   ;;  %v5102_v26 = vld [vmem:[#allocation5 + $0x32c] ss:$16 sps:$4 sm:$0xff]   ;;  %v5144_v63 = vld [vmem:[#allocation7 + $0x164] ss:$16 sps:$4 sm:$0xff]  }
 0x1ee   :  { %v2010_v2 = vmul.f32 0.2, %v2002_v1  ;;  %vm2006_vm3 = vcmp.gt.f32.partialorder %v2002_v1, 0.0  ;;  %v2013_v3 = vsel %vm2005_vm2, %v2001_v61, %v2009_v0  ;;  %3799 = vmatprep.subr.bf16.mxu0 %v5138_v56  ;;  %v5097_v61 = vld [vmem:[#allocation5 + $0x348] ss:$16 sps:$4 sm:$0xff]  }
 0x1ef   :  { %v5542_v9 = vpack.c.bf16 %v2013_v3, %v2013_v3  ;;  %v5100_v0 = vld [vmem:[#allocation5 + $0x328] ss:$16 sps:$4 sm:$0xff]   ;;  %v5147_v3 = vld [vmem:[#allocation7 + $0x144] ss:$16 sps:$4 sm:$0xff]   ;;  %v5238_v49 = vld [vmem:[#allocation7 + $0x320] ss:$16 sps:$4 sm:$0xff]  }
 0x1f0   :  { %v2014_v4 = vsel %vm2006_vm3, %v2002_v1, %v2010_v2  ;;  %v5142_v1 = vld [vmem:[#allocation7 + $0x160] ss:$16 sps:$4 sm:$0xff]   ;;  %v5105_v2 = vld [vmem:[#allocation5 + $0x30c] ss:$16 sps:$4 sm:$0xff]  }
 0x1f1   :  { %v2018_v5 = vpack.c.bf16 %v2014_v4, %v2014_v4  ;;  %3800 = vmatpush2.bf16.msra.mxu0 %v5136_v58  ;;  %v5103_v4 = vld [vmem:[#allocation5 + $0x308] ss:$16 sps:$4 sm:$0xff]   ;;  %v5244_v54 = vld [vmem:[#allocation7 + $0x300] ss:$16 sps:$4 sm:$0xff]   ;;  %v5252_v56 = vld [vmem:[#allocation7 + $0x2ec] ss:$16 sps:$4 sm:$0xff]  }
 0x1f2   :  { %3801 = vmatprep.subr.bf16.mxu0 %v5141_v60 }
 0x1f3   :  { %2882 = vmatprep.mubr.bf16.mxu1 %v2018_v5 }
 0x1f4   :  { %2883 = vmatmul.mubr.bf16.vlgmr.msra.gmra.mxu1 %v5542_v9 }
 0x1f5   :  { %2933 = vmatpush1.bf16.msra.mxu1 %v5058_v8  ;;  %2964 = vmatprep.mubr.bf16.mxu1 %v2018_v5  ;;  %v5145_v5 = vld [vmem:[#allocation7 + $0x140] ss:$16 sps:$4 sm:$0xff]  }
 0x1f6   :  { %2934 = vmatprep.subr.bf16.mxu1 %v5063_v10  ;;  %3802 = vmatpush2.bf16.msra.mxu0 %v5139_v62  ;;  %v5150_v10 = vld [vmem:[#allocation7 + $0x124] ss:$16 sps:$4 sm:$0xff]  }
 0x1f7   :  { %3803 = vmatprep.subr.bf16.mxu0 %v5144_v63 }
 0x1f9   :  { %2935 = vmatpush1.bf16.msra.mxu1 %v5061_v51 }
 0x1fa   :  { %2936 = vmatprep.subr.bf16.mxu1 %v5066_v11  ;;  %3804 = vmatpush2.bf16.msra.mxu0 %v5142_v1  ;;  %v5148_v11 = vld [vmem:[#allocation7 + $0x120] ss:$16 sps:$4 sm:$0xff]  }
 0x1fb   :  { %3805 = vmatprep.subr.bf16.mxu0 %v5147_v3 }
 0x1fd   :  { %2937 = vmatpush1.bf16.msra.mxu1 %v5064_v12 }
 0x1fe   :  { %2938 = vmatprep.subr.bf16.mxu1 %v5069_v13  ;;  %3806 = vmatpush2.bf16.msra.mxu0 %v5145_v5  ;;  %v5153_v13 = vld [vmem:[#allocation7 + $0x104] ss:$16 sps:$4 sm:$0xff]  }
 0x1ff   :  { %3807 = vmatprep.subr.bf16.mxu0 %v5150_v10 }
 0x201   :  { %2939 = vmatpush1.bf16.msra.mxu1 %v5067_v19  ;;  %v5156_v19 = vld [vmem:[#allocation7 + $0x2e4] ss:$16 sps:$4 sm:$0xff]  }
 0x202   :  { %2940 = vmatprep.subr.bf16.mxu1 %v5072_v21  ;;  %3808 = vmatpush2.bf16.msra.mxu0 %v5148_v11  ;;  %v5162_v21 = vld [vmem:[#allocation7 + $0x2c4] ss:$16 sps:$4 sm:$0xff]  }
 0x203   :  { %3809 = vmatprep.subr.bf16.mxu0 %v5153_v13 }
 0x205   :  { %2941 = vmatpush1.bf16.msra.mxu1 %v5070_v23  ;;  %v5168_v23 = vld [vmem:[#allocation7 + $0x2a4] ss:$16 sps:$4 sm:$0xff]  }
 0x206   :  { %2942 = vmatprep.subr.bf16.mxu1 %v5075_v25  ;;  %3810 = vmatpush2.bf16.msra.mxu0 %v5151_v15  ;;  %v5174_v25 = vld [vmem:[#allocation7 + $0x284] ss:$16 sps:$4 sm:$0xff]   ;;  %v5169_v15 = vld [vmem:[#allocation7 + $0xa8] ss:$16 sps:$4 sm:$0xff]  }
 0x207   :  { %3861 = vmatprep.subr.bf16.mxu0 %v5159_v20  ;;  %v5183_v20 = vld [vmem:[#allocation7 + $0x6c] ss:$16 sps:$4 sm:$0xff]  }
 0x209   :  { %2943 = vmatpush1.bf16.msra.mxu1 %v5073_v32  ;;  %v5180_v32 = vld [vmem:[#allocation7 + $0x264] ss:$16 sps:$4 sm:$0xff]  }
 0x20a   :  { %2944 = vmatprep.subr.bf16.mxu1 %v5078_v34  ;;  %v5186_v34 = vld [vmem:[#allocation7 + $0x244] ss:$16 sps:$4 sm:$0xff]  }
 0x20d   :  { %2945 = vmatpush1.bf16.msra.mxu1 %v5076_v6  ;;  %v5192_v6 = vld [vmem:[#allocation7 + $0x224] ss:$16 sps:$4 sm:$0xff]  }
 0x20e   :  { %2946 = vmatprep.subr.bf16.mxu1 %v5081_v27  ;;  %v5198_v27 = vld [vmem:[#allocation7 + $0x204] ss:$16 sps:$4 sm:$0xff]  }
 0x211   :  { %2947 = vmatpush1.bf16.msra.mxu1 %v5079_v30  ;;  %v5204_v30 = vld [vmem:[#allocation7 + $0x3e4] ss:$16 sps:$4 sm:$0xff]  }
 0x212   :  { %2948 = vmatprep.subr.bf16.mxu1 %v5084_v39  ;;  %v5210_v39 = vld [vmem:[#allocation7 + $0x3c4] ss:$16 sps:$4 sm:$0xff]  }
 0x215   :  { %2949 = vmatpush2.bf16.msra.mxu1 %v5082_v36  ;;  %v5216_v36 = vld [vmem:[#allocation7 + $0x3a4] ss:$16 sps:$4 sm:$0xff]  }
 0x216   :  { %2950 = vmatprep.subr.bf16.mxu1 %v5087_v41  ;;  %v5222_v41 = vld [vmem:[#allocation7 + $0x384] ss:$16 sps:$4 sm:$0xff]  }
 0x219   :  { %2951 = vmatpush2.bf16.msra.mxu1 %v5085_v43  ;;  %v5228_v43 = vld [vmem:[#allocation7 + $0x364] ss:$16 sps:$4 sm:$0xff]  }
 0x21a   :  { %2952 = vmatprep.subr.bf16.mxu1 %v5090_v44  ;;  %v5234_v44 = vld [vmem:[#allocation7 + $0x344] ss:$16 sps:$4 sm:$0xff]  }
 0x21d   :  { %2953 = vmatpush2.bf16.msra.mxu1 %v5088_v31  ;;  %v5240_v31 = vld [vmem:[#allocation7 + $0x324] ss:$16 sps:$4 sm:$0xff]  }
 0x21e   :  { %2954 = vmatprep.subr.bf16.mxu1 %v5093_v50 }
 0x221   :  { %2955 = vmatpush2.bf16.msra.mxu1 %v5091_v53  ;;  %v5246_v53 = vld [vmem:[#allocation7 + $0x304] ss:$16 sps:$4 sm:$0xff]  }
 0x222   :  { %2956 = vmatprep.subr.bf16.mxu1 %v5096_v55 }
 0x225   :  { %2957 = vmatpush2.bf16.msra.mxu1 %v5094_v57  ;;  %v5557_v57 = vld [vmem:[%s5604_s5] sm:$0xf] }
 0x226   :  { %2958 = vmatprep.subr.bf16.mxu1 %v5099_v59  ;;  %v2152_v58 = vrot.slane %v5557_v57, %v5506_v7  ;;  %v2156_v59 = vrot.slane %v5557_v57, %v5515_v16 }
 0x229   :  { %2959 = vmatpush2.bf16.msra.mxu1 %v5097_v61 }
 0x22a   :  { %2960 = vmatprep.subr.bf16.mxu1 %v5102_v26 }
 0x22d   :  { %2961 = vmatpush2.bf16.msra.mxu1 %v5100_v0 }
 0x22e   :  { %2962 = vmatprep.subr.bf16.mxu1 %v5105_v2 }
 0x231   :  { %2963 = vmatpush2.bf16.msra.mxu1 %v5103_v4 }
 0x232   :  { %3820 = vmatprep.subr.bf16.mxu1 %v5156_v19  ;;  %v5175_v19 = vld [vmem:[#allocation7 + $0x88] ss:$16 sps:$4 sm:$0xff]  }
 0x234   :  { %2965 = vmatmul.mubr.bf16.vlgmr.msra.gmra.mxu1 %v5542_v9  ;;  %v5546_v8 = vpop.f32.mrf.mxu0  ;;  %v5160_v9 = vld [vmem:[#allocation7 + $0x2c0] ss:$16 sps:$4 sm:$0xff]  }
 0x235   :  { %3821 = vmatpush1.bf16.msra.mxu1 %v5154_v18  ;;  %v2844_v60 = vadd.f32 %v5546_v8, %v2152_v58  ;;  %v5163_v8 = vld [vmem:[#allocation7 + $0xc8] ss:$16 sps:$4 sm:$0xff]   ;;  %v5177_v18 = vld [vmem:[#allocation7 + $0x8c] ss:$16 sps:$4 sm:$0xff]  }
 0x236   :  { %v5548_v51 = vpop.f32.mrf.mxu0  ;;  %3822 = vmatprep.subr.bf16.mxu1 %v5162_v21  ;;  %v5189_v21 = vld [vmem:[#allocation7 + $0x4c] ss:$16 sps:$4 sm:$0xff]  }
 0x237   :  { %v2846_v62 = vadd.f32 %v5548_v51, %v2156_v59  ;;  %v5171_v51 = vld [vmem:[#allocation7 + $0xac] ss:$16 sps:$4 sm:$0xff]  }
 0x238   :  { %v2847_v12 = vpop.f32.mrf.mxu0 }
 0x239   :  { %3823 = vmatpush1.bf16.msra.mxu1 %v5160_v9  ;;  %v5157_v12 = vld [vmem:[#allocation7 + $0xe8] ss:$16 sps:$4 sm:$0xff]  }
 0x23a   :  { %v2848_v14 = vpop.f32.mrf.mxu0  ;;  %3824 = vmatprep.subr.bf16.mxu1 %v5168_v23  ;;  %v5181_v9 = vld [vmem:[#allocation7 + $0x68] ss:$16 sps:$4 sm:$0xff]   ;;  %v5195_v23 = vld [vmem:[#allocation7 + $0x2c] ss:$16 sps:$4 sm:$0xff]  }
 0x23b   :  { %v5165_v14 = vld [vmem:[#allocation7 + $0xcc] ss:$16 sps:$4 sm:$0xff]  }
 0x23d   :  { %3825 = vmatpush1.bf16.msra.mxu1 %v5166_v22  ;;  %v5187_v22 = vld [vmem:[#allocation7 + $0x48] ss:$16 sps:$4 sm:$0xff]  }
 0x23e   :  { %3826 = vmatprep.subr.bf16.mxu1 %v5174_v25  ;;  %v5201_v25 = vld [vmem:[#allocation7 + $0xc] ss:$16 sps:$4 sm:$0xff]  }
 0x241   :  { %3827 = vmatpush1.bf16.msra.mxu1 %v5172_v24  ;;  %v5193_v24 = vld [vmem:[#allocation7 + $0x28] ss:$16 sps:$4 sm:$0xff]  }
 0x242   :  { %3828 = vmatprep.subr.bf16.mxu1 %v5180_v32  ;;  %v5207_v32 = vld [vmem:[#allocation7 + $0x1ec] ss:$16 sps:$4 sm:$0xff]  }
 0x245   :  { %3829 = vmatpush1.bf16.msra.mxu1 %v5178_v29  ;;  %v5199_v29 = vld [vmem:[#allocation7 + $0x8] ss:$16 sps:$4 sm:$0xff]  }
 0x246   :  { %3830 = vmatprep.subr.bf16.mxu1 %v5186_v34  ;;  %v5213_v34 = vld [vmem:[#allocation7 + $0x1cc] ss:$16 sps:$4 sm:$0xff]  }
 0x249   :  { %3831 = vmatpush1.bf16.msra.mxu1 %v5184_v33  ;;  %v5205_v33 = vld [vmem:[#allocation7 + $0x1e8] ss:$16 sps:$4 sm:$0xff]  }
 0x24a   :  { %3832 = vmatprep.subr.bf16.mxu1 %v5192_v6  ;;  %v5219_v6 = vld [vmem:[#allocation7 + $0x1ac] ss:$16 sps:$4 sm:$0xff]  }
 0x24d   :  { %3833 = vmatpush1.bf16.msra.mxu1 %v5190_v47  ;;  %v5211_v47 = vld [vmem:[#allocation7 + $0x1c8] ss:$16 sps:$4 sm:$0xff]  }
 0x24e   :  { %3834 = vmatprep.subr.bf16.mxu1 %v5198_v27  ;;  %v5225_v27 = vld [vmem:[#allocation7 + $0x18c] ss:$16 sps:$4 sm:$0xff]  }
 0x251   :  { %3835 = vmatpush1.bf16.msra.mxu1 %v5196_v35  ;;  %v5217_v35 = vld [vmem:[#allocation7 + $0x1a8] ss:$16 sps:$4 sm:$0xff]  }
 0x252   :  { %3836 = vmatprep.subr.bf16.mxu1 %v5204_v30  ;;  %v5231_v30 = vld [vmem:[#allocation7 + $0x16c] ss:$16 sps:$4 sm:$0xff]  }
 0x255   :  { %3837 = vmatpush2.bf16.msra.mxu1 %v5202_v17  ;;  %v5223_v17 = vld [vmem:[#allocation7 + $0x188] ss:$16 sps:$4 sm:$0xff]  }
 0x256   :  { %3838 = vmatprep.subr.bf16.mxu1 %v5210_v39  ;;  %v5237_v39 = vld [vmem:[#allocation7 + $0x14c] ss:$16 sps:$4 sm:$0xff]  }
 0x259   :  { %3839 = vmatpush2.bf16.msra.mxu1 %v5208_v38  ;;  %v5229_v38 = vld [vmem:[#allocation7 + $0x168] ss:$16 sps:$4 sm:$0xff]  }
 0x25a   :  { %3840 = vmatprep.subr.bf16.mxu1 %v5216_v36  ;;  %v5235_v36 = vld [vmem:[#allocation7 + $0x148] ss:$16 sps:$4 sm:$0xff]  }
 0x25d   :  { %3841 = vmatpush2.bf16.msra.mxu1 %v5214_v40  ;;  %v2160_v40 = vrot.slane %v5557_v57, %v5533_v45 }
 0x25e   :  { %3842 = vmatprep.subr.bf16.mxu1 %v5222_v41  ;;  %v5243_v41 = vld [vmem:[#allocation7 + $0x12c] ss:$16 sps:$4 sm:$0xff]  }
 0x261   :  { %3843 = vmatpush2.bf16.msra.mxu1 %v5220_v37  ;;  %v2164_v37 = vrot.slane %v5557_v57, %v5536_v48 }
 0x262   :  { %3844 = vmatprep.subr.bf16.mxu1 %v5228_v43 }
 0x265   :  { %3845 = vmatpush2.bf16.msra.mxu1 %v5226_v42 }
 0x266   :  { %3846 = vmatprep.subr.bf16.mxu1 %v5234_v44 }
 0x269   :  { %3847 = vmatpush2.bf16.msra.mxu1 %v5232_v28  ;;  %v5241_v28 = vld [vmem:[#allocation7 + $0x128] ss:$16 sps:$4 sm:$0xff]  }
 0x26a   :  { %3848 = vmatprep.subr.bf16.mxu1 %v5240_v31 }
 0x26d   :  { %3849 = vmatpush2.bf16.msra.mxu1 %v5238_v49  ;;  %v5249_v49 = vld [vmem:[#allocation7 + $0x10c] ss:$16 sps:$4 sm:$0xff]  }
 0x26e   :  { %3850 = vmatprep.subr.bf16.mxu1 %v5246_v53 }
 0x271   :  { %3851 = vmatpush2.bf16.msra.mxu1 %v5244_v54 }
 0x272   :  { %3902 = vmatprep.subr.bf16.mxu1 %v5252_v56  ;;  %v5247_v56 = vld [vmem:[#allocation7 + $0x108] ss:$16 sps:$4 sm:$0xff]  }
 0x274   :  { %v5550_v46 = vpop.f32.mrf.mxu0 }
 0x275   :  { %v2926_v42 = vadd.f32 %v5550_v46, %v2160_v40 }
 0x276   :  { %v5552_v50 = vpop.f32.mrf.mxu0 }
 0x277   :  { %v2928_v44 = vadd.f32 %v5552_v50, %v2164_v37 }
 0x278   :  { %v2929_v52 = vpop.f32.mrf.mxu0 }
 0x27a   :  { %v2930_v55 = vpop.f32.mrf.mxu0 }
 0x2b4   :  { %v2884_v61 = vpop.f32.mrf.mxu1 }
 0x2b5   :  { %v2885_v26 = vadd.f32 %v2884_v61, %v2844_v60  ;;  %v5250_v61 = vld [vmem:[#allocation7 + $0x2e8] ss:$16 sps:$4 sm:$0xff]  }
 0x2b6   :  { %v2886_v63 = vpop.f32.mrf.mxu1 }
 0x2b7   :  { %vm2973_vm4 = vcmp.gt.f32.partialorder %v2885_v26, 0.0  ;;  %v2977_v0 = vmul.f32 0.2, %v2885_v26  ;;  %v2887_v1 = vadd.f32 %v2886_v63, %v2846_v62  ;;  %v5255_v62 = vld [vmem:[#allocation7 + $0x2cc] ss:$16 sps:$4 sm:$0xff]  }
 0x2b8   :  { %v2888_v2 = vpop.f32.mrf.mxu1  ;;  %v5258_v63 = vld [vmem:[#allocation7 + $0x2ac] ss:$16 sps:$4 sm:$0xff]  }
 0x2b9   :  { %vm2974_vm5 = vcmp.gt.f32.partialorder %v2887_v1, 0.0  ;;  %v2978_v3 = vmul.f32 0.2, %v2887_v1  ;;  %v2981_v4 = vsel %vm2973_vm4, %v2885_v26, %v2977_v0  ;;  %v5253_v26 = vld [vmem:[#allocation7 + $0x2c8] ss:$16 sps:$4 sm:$0xff]  }
 0x2ba   :  { %v2889_v5 = vpop.f32.mrf.mxu1  ;;  %v5565_v13 = vpack.c.bf16 %v2981_v4, %v2981_v4  ;;  %v5256_v0 = vld [vmem:[#allocation7 + $0x2a8] ss:$16 sps:$4 sm:$0xff]  }
 0x2bb   :  { %v2982_v10 = vsel %vm2974_vm5, %v2887_v1, %v2978_v3  ;;  %v5261_v1 = vld [vmem:[#allocation7 + $0x28c] ss:$16 sps:$4 sm:$0xff]   ;;  %v5259_v2 = vld [vmem:[#allocation7 + $0x288] ss:$16 sps:$4 sm:$0xff]  }
 0x2bc   :  { %v2986_v11 = vpack.c.bf16 %v2982_v10, %v2982_v10  ;;  %v5264_v3 = vld [vmem:[#allocation7 + $0x26c] ss:$16 sps:$4 sm:$0xff]   ;;  %v5262_v4 = vld [vmem:[#allocation7 + $0x268] ss:$16 sps:$4 sm:$0xff]  }
 0x2bd   :  { %v5267_v5 = vld [vmem:[#allocation7 + $0x24c] ss:$16 sps:$4 sm:$0xff]   ;;  %v5265_v10 = vld [vmem:[#allocation7 + $0x248] ss:$16 sps:$4 sm:$0xff]  }
 0x2be   :  { %3811 = vmatprep.mubr.bf16.mxu0 %v2986_v11 }
 0x2bf   :  { %3812 = vmatmul.mubr.bf16.vlgmr.msra.gmra.mxu0 %v5565_v13 }
 0x2c0   :  { %3862 = vmatpush1.bf16.msra.mxu0 %v5157_v12  ;;  %3893 = vmatprep.mubr.bf16.mxu0 %v2986_v11  ;;  %v5270_v11 = vld [vmem:[#allocation7 + $0x22c] ss:$16 sps:$4 sm:$0xff]   ;;  %v5268_v12 = vld [vmem:[#allocation7 + $0x228] ss:$16 sps:$4 sm:$0xff]  }
 0x2c1   :  { %3863 = vmatprep.subr.bf16.mxu0 %v5165_v14  ;;  %v5271_v14 = vld [vmem:[#allocation7 + $0x208] ss:$16 sps:$4 sm:$0xff]  }
 0x2c4   :  { %3864 = vmatpush1.bf16.msra.mxu0 %v5163_v8  ;;  %v5276_v8 = vld [vmem:[#allocation7 + $0x3ec] ss:$16 sps:$4 sm:$0xff]  }
 0x2c5   :  { %3865 = vmatprep.subr.bf16.mxu0 %v5171_v51  ;;  %v5274_v51 = vld [vmem:[#allocation7 + $0x3e8] ss:$16 sps:$4 sm:$0xff]  }
 0x2c8   :  { %3866 = vmatpush1.bf16.msra.mxu0 %v5169_v15  ;;  %v5279_v15 = vld [vmem:[#allocation7 + $0x3cc] ss:$16 sps:$4 sm:$0xff]  }
 0x2c9   :  { %3867 = vmatprep.subr.bf16.mxu0 %v5177_v18  ;;  %v5277_v18 = vld [vmem:[#allocation7 + $0x3c8] ss:$16 sps:$4 sm:$0xff]  }
 0x2cc   :  { %3868 = vmatpush1.bf16.msra.mxu0 %v5175_v19  ;;  %v5282_v19 = vld [vmem:[#allocation7 + $0x3ac] ss:$16 sps:$4 sm:$0xff]  }
 0x2cd   :  { %3869 = vmatprep.subr.bf16.mxu0 %v5183_v20  ;;  %v5280_v20 = vld [vmem:[#allocation7 + $0x3a8] ss:$16 sps:$4 sm:$0xff]  }
 0x2d0   :  { %3870 = vmatpush1.bf16.msra.mxu0 %v5181_v9  ;;  %v5285_v9 = vld [vmem:[#allocation7 + $0x38c] ss:$16 sps:$4 sm:$0xff]  }
 0x2d1   :  { %3871 = vmatprep.subr.bf16.mxu0 %v5189_v21  ;;  %v5283_v21 = vld [vmem:[#allocation7 + $0x388] ss:$16 sps:$4 sm:$0xff]  }
 0x2d4   :  { %3872 = vmatpush1.bf16.msra.mxu0 %v5187_v22  ;;  %v5288_v22 = vld [vmem:[#allocation7 + $0x36c] ss:$16 sps:$4 sm:$0xff]  }
 0x2d5   :  { %3873 = vmatprep.subr.bf16.mxu0 %v5195_v23  ;;  %v5286_v23 = vld [vmem:[#allocation7 + $0x368] ss:$16 sps:$4 sm:$0xff]  }
 0x2d8   :  { %3874 = vmatpush1.bf16.msra.mxu0 %v5193_v24  ;;  %v5291_v24 = vld [vmem:[#allocation7 + $0x34c] ss:$16 sps:$4 sm:$0xff]  }
 0x2d9   :  { %3875 = vmatprep.subr.bf16.mxu0 %v5201_v25  ;;  %v5289_v25 = vld [vmem:[#allocation7 + $0x348] ss:$16 sps:$4 sm:$0xff]  }
 0x2dc   :  { %3876 = vmatpush1.bf16.msra.mxu0 %v5199_v29  ;;  %v5294_v29 = vld [vmem:[#allocation7 + $0x32c] ss:$16 sps:$4 sm:$0xff]  }
 0x2dd   :  { %3877 = vmatprep.subr.bf16.mxu0 %v5207_v32  ;;  %v5292_v32 = vld [vmem:[#allocation7 + $0x328] ss:$16 sps:$4 sm:$0xff]  }
 0x2e0   :  { %3878 = vmatpush2.bf16.msra.mxu0 %v5205_v33  ;;  %v5297_v33 = vld [vmem:[#allocation7 + $0x30c] ss:$16 sps:$4 sm:$0xff]  }
 0x2e1   :  { %3879 = vmatprep.subr.bf16.mxu0 %v5213_v34  ;;  %v5295_v34 = vld [vmem:[#allocation7 + $0x308] ss:$16 sps:$4 sm:$0xff]  }
 0x2e4   :  { %3880 = vmatpush2.bf16.msra.mxu0 %v5211_v47 }
 0x2e5   :  { %3881 = vmatprep.subr.bf16.mxu0 %v5219_v6 }
 0x2e8   :  { %3882 = vmatpush2.bf16.msra.mxu0 %v5217_v35 }
 0x2e9   :  { %3883 = vmatprep.subr.bf16.mxu0 %v5225_v27 }
 0x2ec   :  { %3884 = vmatpush2.bf16.msra.mxu0 %v5223_v17  ;;  %v3117_v17 = vld [vmem:[%s5606_s7] sm:$0xf] }
 0x2ed   :  { %3885 = vmatprep.subr.bf16.mxu0 %v5231_v30  ;;  %v3122_v30 = vrot.slane %v3117_v17, %v5506_v7 }
 0x2f0   :  { %3886 = vmatpush2.bf16.msra.mxu0 %v5229_v38  ;;  %v3126_v38 = vrot.slane %v3117_v17, %v5515_v16 }
 0x2f1   :  { %3887 = vmatprep.subr.bf16.mxu0 %v5237_v39 }
 0x2f4   :  { %v2966_v43 = vpop.f32.mrf.mxu1  ;;  %3888 = vmatpush2.bf16.msra.mxu0 %v5235_v36 }
 0x2f5   :  { %v2967_v31 = vadd.f32 %v2966_v43, %v2926_v42  ;;  %3889 = vmatprep.subr.bf16.mxu0 %v5243_v41  ;;  %v3955_v42 = vld [vmem:[%s5607_s8] sm:$0xf] }
 0x2f6   :  { %v2968_v52 = vpop.f32.mrf.mxu1 }
 0x2f7   :  { %vm2975_vm6 = vcmp.gt.f32.partialorder %v2967_v31, 0.0  ;;  %v2979_v53 = vmul.f32 0.2, %v2967_v31  ;;  %v2969_v54 = vadd.f32 %v2968_v52, %v2928_v44 }
 0x2f8   :  { %v2970_v55 = vpop.f32.mrf.mxu1  ;;  %3890 = vmatpush2.bf16.msra.mxu0 %v5241_v28 }
 0x2f9   :  { %vm2976_vm7 = vcmp.gt.f32.partialorder %v2969_v54, 0.0  ;;  %v2980_v57 = vmul.f32 0.2, %v2969_v54  ;;  %3891 = vmatprep.subr.bf16.mxu0 %v5249_v49  ;;  %v2983_v58 = vsel %vm2975_vm6, %v2967_v31, %v2979_v53  ;;  %v3960_v53 = vrot.slane %v3955_v42, %v5506_v7 }
 0x2fa   :  { %v2971_v46 = vpop.f32.mrf.mxu1  ;;  %v5574_v50 = vpack.c.bf16 %v2983_v58, %v2983_v58 }
 0x2fb   :  { %v2984_v59 = vsel %vm2976_vm7, %v2969_v54, %v2980_v57  ;;  %v3964_v54 = vrot.slane %v3955_v42, %v5515_v16  ;;  %v3968_v16 = vrot.slane %v3955_v42, %v5533_v45 }
 0x2fc   :  { %3892 = vmatpush2.bf16.msra.mxu0 %v5247_v56  ;;  %v2988_v60 = vpack.c.bf16 %v2984_v59, %v2984_v59 }
 0x2fe   :  { %3852 = vmatprep.mubr.bf16.mxu1 %v2988_v60 }
 0x2ff   :  { %3853 = vmatmul.mubr.bf16.vlgmr.msra.gmra.mxu1 %v5574_v50  ;;  %3894 = vmatmul.mubr.bf16.vlgmr.msra.gmra.mxu0 %v5565_v13  ;;  %v5273_v13 = vld [vmem:[#allocation7 + $0x20c] ss:$16 sps:$4 sm:$0xff]  }
 0x300   :  { %3903 = vmatpush1.bf16.msra.mxu1 %v5250_v61  ;;  %3934 = vmatprep.mubr.bf16.mxu1 %v2988_v60 }
 0x301   :  { %3904 = vmatprep.subr.bf16.mxu1 %v5255_v62  ;;  %v3134_v62 = vrot.slane %v3117_v17, %v5536_v48 }
 0x304   :  { %3905 = vmatpush1.bf16.msra.mxu1 %v5253_v26 }
 0x305   :  { %3906 = vmatprep.subr.bf16.mxu1 %v5258_v63 }
 0x308   :  { %3907 = vmatpush1.bf16.msra.mxu1 %v5256_v0 }
 0x309   :  { %3908 = vmatprep.subr.bf16.mxu1 %v5261_v1 }
 0x30c   :  { %3909 = vmatpush1.bf16.msra.mxu1 %v5259_v2 }
 0x30d   :  { %3910 = vmatprep.subr.bf16.mxu1 %v5264_v3 }
 0x310   :  { %3911 = vmatpush1.bf16.msra.mxu1 %v5262_v4 }
 0x311   :  { %3912 = vmatprep.subr.bf16.mxu1 %v5267_v5  ;;  %v3972_v5 = vrot.slane %v3955_v42, %v5536_v48 }
 0x314   :  { %3913 = vmatpush1.bf16.msra.mxu1 %v5265_v10 }
 0x315   :  { %3914 = vmatprep.subr.bf16.mxu1 %v5270_v11 }
 0x318   :  { %3915 = vmatpush1.bf16.msra.mxu1 %v5268_v12 }
 0x319   :  { %3916 = vmatprep.subr.bf16.mxu1 %v5273_v13 }
 0x31c   :  { %3917 = vmatpush1.bf16.msra.mxu1 %v5271_v14 }
 0x31d   :  { %3918 = vmatprep.subr.bf16.mxu1 %v5276_v8 }
 0x320   :  { %3919 = vmatpush2.bf16.msra.mxu1 %v5274_v51 }
 0x321   :  { %3920 = vmatprep.subr.bf16.mxu1 %v5279_v15 }
 0x324   :  { %3921 = vmatpush2.bf16.msra.mxu1 %v5277_v18 }
 0x325   :  { %3922 = vmatprep.subr.bf16.mxu1 %v5282_v19 }
 0x328   :  { %3923 = vmatpush2.bf16.msra.mxu1 %v5280_v20 }
 0x329   :  { %3924 = vmatprep.subr.bf16.mxu1 %v5285_v9 }
 0x32c   :  { %3925 = vmatpush2.bf16.msra.mxu1 %v5283_v21 }
 0x32d   :  { %3926 = vmatprep.subr.bf16.mxu1 %v5288_v22 }
 0x330   :  { %3927 = vmatpush2.bf16.msra.mxu1 %v5286_v23 }
 0x331   :  { %3928 = vmatprep.subr.bf16.mxu1 %v5291_v24 }
 0x334   :  { %3929 = vmatpush2.bf16.msra.mxu1 %v5289_v25 }
 0x335   :  { %3930 = vmatprep.subr.bf16.mxu1 %v5294_v29 }
 0x338   :  { %3931 = vmatpush2.bf16.msra.mxu1 %v5292_v32 }
 0x339   :  { %3932 = vmatprep.subr.bf16.mxu1 %v5297_v33 }
 0x33c   :  { %3933 = vmatpush2.bf16.msra.mxu1 %v5295_v34 }
 0x33f   :  { %3935 = vmatmul.mubr.bf16.vlgmr.msra.gmra.mxu1 %v5574_v50  ;;  %v3130_v50 = vrot.slane %v3117_v17, %v5533_v45  ;;  %v3987_v45 = vstv %s5608_s9 }
 0x37f   :  { %v3813_v47 = vpop.f32.mrf.mxu0 }
 0x380   :  { %v3814_v39 = vadd.f32 %v3813_v47, %v3122_v30 }
 0x381   :  { %v3815_v6 = vpop.f32.mrf.mxu0 }
 0x382   :  { %v3816_v37 = vadd.f32 %v3815_v6, %v3126_v38 }
 0x383   :  { %v3817_v35 = vpop.f32.mrf.mxu0 }
 0x385   :  { %v3818_v27 = vpop.f32.mrf.mxu0 }
 0x3bf   :  { %v3854_v40 = vpop.f32.mrf.mxu1  ;;  %v3895_v36 = vpop.f32.mrf.mxu0 }
 0x3c0   :  { %v3855_v41 = vadd.f32 %v3854_v40, %v3814_v39  ;;  %v3896_v26 = vadd.f32 %v3895_v36, %v3130_v50 }
 0x3c1   :  { %v3856_v43 = vpop.f32.mrf.mxu1  ;;  %v3897_v28 = vpop.f32.mrf.mxu0 }
 0x3c2   :  { %vm3943_vm8 = vcmp.gt.f32.partialorder %v3855_v41, 0.0  ;;  %v3947_v44 = vmul.f32 0.2, %v3855_v41  ;;  %v3857_v31 = vadd.f32 %v3856_v43, %v3816_v37  ;;  %v3898_v0 = vadd.f32 %v3897_v28, %v3134_v62 }
 0x3c3   :  { %v3858_v49 = vpop.f32.mrf.mxu1  ;;  %v3899_v52 = vpop.f32.mrf.mxu0 }
 0x3c4   :  { %v3951_v55 = vsel %vm3943_vm8, %v3855_v41, %v3947_v44  ;;  %vm3944_vm9 = vcmp.gt.f32.partialorder %v3857_v31, 0.0  ;;  %v3948_v56 = vmul.f32 0.2, %v3857_v31 }
 0x3c5   :  { %v3859_v57 = vpop.f32.mrf.mxu1  ;;  %v3900_v58 = vpop.f32.mrf.mxu0  ;;  %v3977_v59 = vmul.f32 %v3960_v53, %v3951_v55 }
 0x3c6   :  { %v3952_v46 = vsel %vm3944_vm9, %v3857_v31, %v3948_v56 }
 0x3c7   :  { %v3978_v60 = vmul.f32 %v3964_v54, %v3952_v46 }
 0x3c9   :  { %v3981_v61 = vadd.f32 %v3978_v60, %v3977_v59 }
 0x3ff   :  { %v3936_v63 = vpop.f32.mrf.mxu1 }
 0x400   :  { %v3937_v1 = vadd.f32 %v3936_v63, %v3896_v26 }
 0x401   :  { %v3938_v7 = vpop.f32.mrf.mxu1 }
 0x402   :  { %vm3945_vm10 = vcmp.gt.f32.partialorder %v3937_v1, 0.0  ;;  %v3949_v2 = vmul.f32 0.2, %v3937_v1  ;;  %v3939_v3 = vadd.f32 %v3938_v7, %v3898_v0 }
 0x403   :  { %v3940_v4 = vpop.f32.mrf.mxu1 }
 0x404   :  { %vm3946_vm11 = vcmp.gt.f32.partialorder %v3939_v3, 0.0  ;;  %v3950_v10 = vmul.f32 0.2, %v3939_v3  ;;  %v3953_v11 = vsel %vm3945_vm10, %v3937_v1, %v3949_v2 }
 0x405   :  { %v3941_v12 = vpop.f32.mrf.mxu1  ;;  %v3979_v13 = vmul.f32 %v3968_v16, %v3953_v11 }
 0x406   :  { %v3954_v14 = vsel %vm3946_vm11, %v3939_v3, %v3950_v10 }
 0x407   :  { %v3980_v8 = vmul.f32 %v3972_v5, %v3954_v14  ;;  %v3982_v51 = vadd.f32 %v3981_v61, %v3979_v13 }
 0x409   :  { %v3983_v15 = vadd.f32 %v3982_v51, %v3980_v8 }
 0x40b   :  { %3984 = vadd.xlane.f32.xlu0 %v3983_v15 }
 0x494   :  { %v3985_v18 = vpop.xlane.xlu0 %3984 }
 0x495   :  { %v3988_v19 = vadd.f32 %v3987_v45, %v3985_v18 }
 0x497   :  { %3990 = vst.msk [vmem:[%s5609_s10] sm:$0xff] %vm3989_vm12, %v3988_v19 }
 0x498   :  { %3995 = vsyncpa [#allocation4], 1 }
 0x499   :  { %3996 = vsyncpa [#allocation6], 1 }

</bundles_post_ra>
